<compile_context>
chip_gen: v5e
topology: v5e:2x2
jax: 0.10.0
libtpu: 0.0.40
codegen_flags: <defaults>
</compile_context>

<pallas_src>
import jax
import jax.numpy as jnp
from jax.experimental import pallas as pl
from jax.experimental.pallas import tpu as pltpu


def _cnn_head_kernel(x_ref, w1_ref, b1_ref, w2_ref, b2_ref, out_ref, h_acc):
    """Fused fc1 (+bias, ReLU) -> fc2 (+bias); K accumulated over grid axis 1."""
    k = pl.program_id(1)

    @pl.when(k == 0)
    def _():
        h_acc[...] = jnp.zeros_like(h_acc)

    # Cast x to bf16 in-kernel (no bf16 copy of x ever touches HBM); f32 acc.
    h_acc[...] += jnp.dot(x_ref[...].astype(jnp.bfloat16), w1_ref[...],
                          preferred_element_type=jnp.float32)

    @pl.when(k == pl.num_programs(1) - 1)
    def _():
        h = jnp.maximum(h_acc[...] + b1_ref[...], 0.0)
        # dropout(p=0.25) is identity at inference time.
        y = jnp.dot(h.astype(w2_ref.dtype), w2_ref[...],
                    preferred_element_type=jnp.float32)
        out_ref[...] = (y + b2_ref[...]).astype(out_ref.dtype)


def _round_up(x, m):
    return ((x + m - 1) // m) * m


def cnn_forward(feature, params, classes):
    """feature: (B, 2048) float32.  Returns logits (B, classes) float32."""
    w1, b1, w2, b2 = params
    in_dim, hidden = w1.shape
    c_pad = w2.shape[1]
    B = feature.shape[0]

    # --- batch tiling: multiple of 8 sublanes (x block is f32); prefer >= 2
    #     grid steps so the "parallel" axis shards across v7x's 2 TCs; cap at
    #     512 rows to amortize per-step overhead while staying inside VMEM.
    if B <= 8:
        tile_b = 8
    else:
        tile_b = max(8, min(512, _round_up(pl.cdiv(B, 2), 8)))
    nb = pl.cdiv(B, tile_b)

    # --- contraction tiling: only split K for the tiny-batch (single batch
    #     block) case, where the kernel is w1-DMA bound and chunking lets the
    #     next w1 chunk's DMA overlap the current chunk's compute.
    if nb == 1 and in_dim > 512 and in_dim % 512 == 0:
        tk = 512
    else:
        tk = in_dim
    nk = in_dim // tk

    # Constant-index blocks are single-buffered; w1 keeps 2 buffers only when
    # it is actually streamed along K.
    resident = pl.Buffered(1)
    w1_buf = pl.Buffered(1) if nk == 1 else pl.Buffered(2)

    # VMEM working set (bytes) -> right-sized vmem limit with headroom.
    vmem_bytes = (
        2 * tile_b * tk * 4                        # x blocks (f32, 2 buffers)
        + (1 if nk == 1 else 2) * tk * hidden * 2  # w1 (bf16)
        + hidden * c_pad * 2                       # w2 (bf16, resident)
        + 8 * hidden * 4 + 8 * c_pad * 4           # biases (f32, resident)
        + 2 * tile_b * c_pad * 4                   # out blocks (f32, 2 buffers)
        + tile_b * hidden * 4                      # hidden accumulator scratch
    )
    vmem_limit = max(8 << 20, min(int(vmem_bytes * 1.5) + (2 << 20), 32 << 20))

    cost = pl.CostEstimate(
        flops=2 * B * (in_dim * hidden + hidden * c_pad),
        transcendentals=0,
        bytes_accessed=(B * in_dim * 4 + in_dim * hidden * 2
                        + hidden * c_pad * 2 + (hidden + c_pad) * 4
                        + B * c_pad * 4),
    )

    out = pl.pallas_call(
        _cnn_head_kernel,
        out_shape=jax.ShapeDtypeStruct((B, c_pad), jnp.float32),
        grid_spec=pltpu.PrefetchScalarGridSpec(
            num_scalar_prefetch=0,
            grid=(nb, nk),
            in_specs=[
                pl.BlockSpec((tile_b, tk), lambda i, k: (i, k)),        # x
                pl.BlockSpec((tk, hidden), lambda i, k: (k, 0),
                             pipeline_mode=w1_buf),                     # w1
                pl.BlockSpec((1, hidden), lambda i, k: (0, 0),
                             pipeline_mode=resident),                   # b1
                pl.BlockSpec((hidden, c_pad), lambda i, k: (0, 0),
                             pipeline_mode=resident),                   # w2
                pl.BlockSpec((1, c_pad), lambda i, k: (0, 0),
                             pipeline_mode=resident),                   # b2
            ],
            out_specs=pl.BlockSpec((tile_b, c_pad), lambda i, k: (i, 0)),
            scratch_shapes=[pltpu.VMEM((tile_b, hidden), jnp.float32)],
        ),
        compiler_params=pltpu.CompilerParams(
            dimension_semantics=("parallel", "arbitrary"),
            vmem_limit_bytes=vmem_limit,
        ),
        cost_estimate=cost,
    )(feature, w1, b1, w2, b2)

    return out[:, :classes]


def init_params(key, classes=50, in_dim=2048, hidden=1024):
    """Synthetic init matching PyTorch nn.Linear shapes.

    nn.Linear(in, out) stores weight (out, in); we keep the transpose (in, out)
    so the kernel does x @ W directly. Weights are bf16 (MXU operands), biases
    f32. fc2's output dim is zero-padded to a multiple of 128 lanes so the
    output store is lane-dense.
    """
    c_pad = _round_up(classes, 128)
    ks = jax.random.split(key, 4)

    def unif(k, shape, fan_in):
        bound = 1.0 / jnp.sqrt(jnp.float32(fan_in))
        return jax.random.uniform(k, shape, jnp.float32, -bound, bound)

    w1 = unif(ks[0], (in_dim, hidden), in_dim).astype(jnp.bfloat16)
    b1 = unif(ks[1], (1, hidden), in_dim)
    w2_raw = unif(ks[2], (hidden, classes), hidden)
    b2_raw = unif(ks[3], (1, classes), hidden)
    w2 = jnp.zeros((hidden, c_pad), jnp.float32)
    w2 = w2.at[:, :classes].set(w2_raw).astype(jnp.bfloat16)
    b2 = jnp.zeros((1, c_pad), jnp.float32).at[:, :classes].set(b2_raw)
    return (w1, b1, w2, b2)


def _reference(feature, params, classes):
    """Pure-JAX reference using the same bf16 operands / f32 accumulation."""
    w1, b1, w2, b2 = params
    h = jnp.dot(feature.astype(jnp.bfloat16), w1,
                preferred_element_type=jnp.float32) + b1
    h = jnp.maximum(h, 0.0)
    y = jnp.dot(h.astype(jnp.bfloat16), w2,
                preferred_element_type=jnp.float32) + b2
    return y[:, :classes]


if __name__ == "__main__":
    classes, in_dim, hidden = 50, 2048, 1024
    batch = 8

    key = jax.random.PRNGKey(0)
    k_x, k_p = jax.random.split(key, 2)
    # mode='f': caller supplies (B, 2048) features directly.
    feature = jax.random.normal(k_x, (batch, in_dim), jnp.float32)
    params = init_params(k_p, classes=classes, in_dim=in_dim, hidden=hidden)

    logits = jax.jit(cnn_forward, static_argnums=(2,))(feature, params, classes)
    jax.block_until_ready(logits)

    ref = _reference(feature, params, classes)
    assert logits.shape == (batch, classes)
    assert jnp.allclose(logits, ref, atol=1e-2, rtol=1e-2)

    print("KERNEL_OK")
</pallas_src>

<mosaic_0001>
module attributes {stable_mosaic.version = 11 : i64} {
  func.func @_cnn_head_kernel(%arg0: i32, %arg1: i32, %arg2: memref<8x512xf32, #tpu.memory_space<vmem>>, %arg3: memref<512x1024xbf16, #tpu.memory_space<vmem>>, %arg4: memref<1x1024xf32, #tpu.memory_space<vmem>>, %arg5: memref<1024x128xbf16, #tpu.memory_space<vmem>>, %arg6: memref<1x128xf32, #tpu.memory_space<vmem>>, %arg7: memref<8x128xf32, #tpu.memory_space<vmem>>, %arg8: memref<8x1024xf32, #tpu.memory_space<vmem>>) attributes {dimension_semantics = [#tpu.dimension_semantics<parallel>, #tpu.dimension_semantics<arbitrary>], iteration_bounds = array<i64: 1, 4>, scalar_prefetch = 0 : i64, scratch_operands = 1 : i64, tpu.core_type = #tpu.core_type<tc>, window_params = [{transform_indices = @transform_0, window_bounds = array<i64: 8, 512>}, {pipeline_mode = #tpu.pipeline_mode<double_buffered>, transform_indices = @transform_1, window_bounds = array<i64: 512, 1024>}, {pipeline_mode = #tpu.pipeline_mode<synchronous>, transform_indices = @transform_2, window_bounds = array<i64: 1, 1024>}, {pipeline_mode = #tpu.pipeline_mode<synchronous>, transform_indices = @transform_3, window_bounds = array<i64: 1024, 128>}, {pipeline_mode = #tpu.pipeline_mode<synchronous>, transform_indices = @transform_4, window_bounds = array<i64: 1, 128>}, {transform_indices = @transform_5, window_bounds = array<i64: 8, 128>}]} {
    %c0_i32 = arith.constant 0 : i32
    %0 = arith.cmpi eq, %arg1, %c0_i32 : i32
    %1 = arith.extui %0 : i1 to i32
    %c0_i32_0 = arith.constant 0 : i32
    %2 = arith.cmpi ne, %1, %c0_i32_0 : i32
    scf.if %2 {
      %cst_9 = arith.constant 0.000000e+00 : f32
      %13 = vector.broadcast %cst_9 : f32 to vector<8x1024xf32>
      %c0_10 = arith.constant 0 : index
      %c0_11 = arith.constant 0 : index
      %14 = vector.load %arg8[%c0_10, %c0_11] : memref<8x1024xf32, #tpu.memory_space<vmem>>, vector<8x1024xf32>
      tpu.vector_store %arg8[%c0_10, %c0_11], %13 {strides = array<i32>} : memref<8x1024xf32, #tpu.memory_space<vmem>>, vector<8x1024xf32>,
    } else {
    }
    %c0 = arith.constant 0 : index
    %c0_1 = arith.constant 0 : index
    %3 = vector.load %arg8[%c0, %c0_1] : memref<8x1024xf32, #tpu.memory_space<vmem>>, vector<8x1024xf32>
    %c0_2 = arith.constant 0 : index
    %c0_3 = arith.constant 0 : index
    %4 = vector.load %arg2[%c0_2, %c0_3] : memref<8x512xf32, #tpu.memory_space<vmem>>, vector<8x512xf32>
    %5 = arith.truncf %4 : vector<8x512xf32> to vector<8x512xbf16>
    %c0_4 = arith.constant 0 : index
    %c0_5 = arith.constant 0 : index
    %6 = vector.load %arg3[%c0_4, %c0_5] : memref<512x1024xbf16, #tpu.memory_space<vmem>>, vector<512x1024xbf16>
    %cst = arith.constant dense<0.000000e+00> : vector<8x1024xf32>
    %7 = tpu.matmul %5, %6, %cst {dimension_numbers = #tpu.dot_dimension_numbers<[1], [0], [0], [1], [0, 0, 1, 1], [], []>} : vector<8x512xbf16>, vector<512x1024xbf16>, vector<8x1024xf32> -> vector<8x1024xf32>
    %8 = arith.addf %3, %7 : vector<8x1024xf32>
    %c0_6 = arith.constant 0 : index
    %c0_7 = arith.constant 0 : index
    %9 = vector.load %arg8[%c0_6, %c0_7] : memref<8x1024xf32, #tpu.memory_space<vmem>>, vector<8x1024xf32>
    tpu.vector_store %arg8[%c0_6, %c0_7], %8 {strides = array<i32>} : memref<8x1024xf32, #tpu.memory_space<vmem>>, vector<8x1024xf32>,
    %c3_i32 = arith.constant 3 : i32
    %10 = arith.cmpi eq, %arg1, %c3_i32 : i32
    %11 = arith.extui %10 : i1 to i32
    %c0_i32_8 = arith.constant 0 : i32
    %12 = arith.cmpi ne, %11, %c0_i32_8 : i32
    scf.if %12 {
      %c0_9 = arith.constant 0 : index
      %c0_10 = arith.constant 0 : index
      %13 = vector.load %arg8[%c0_9, %c0_10] : memref<8x1024xf32, #tpu.memory_space<vmem>>, vector<8x1024xf32>
      %c0_11 = arith.constant 0 : index
      %c0_12 = arith.constant 0 : index
      %14 = vector.load %arg4[%c0_11, %c0_12] : memref<1x1024xf32, #tpu.memory_space<vmem>>, vector<1x1024xf32>
      %15 = vector.broadcast %14 : vector<1x1024xf32> to vector<8x1024xf32>
      %16 = arith.addf %13, %15 : vector<8x1024xf32>
      %cst_13 = arith.constant 0.000000e+00 : f32
      %17 = vector.broadcast %cst_13 : f32 to vector<8x1024xf32>
      %18 = arith.maximumf %16, %17 : vector<8x1024xf32>
      %19 = arith.truncf %18 : vector<8x1024xf32> to vector<8x1024xbf16>
      %c0_14 = arith.constant 0 : index
      %c0_15 = arith.constant 0 : index
      %20 = vector.load %arg5[%c0_14, %c0_15] : memref<1024x128xbf16, #tpu.memory_space<vmem>>, vector<1024x128xbf16>
      %cst_16 = arith.constant dense<0.000000e+00> : vector<8x128xf32>
      %21 = tpu.matmul %19, %20, %cst_16 {dimension_numbers = #tpu.dot_dimension_numbers<[1], [0], [0], [1], [0, 0, 1, 1], [], []>} : vector<8x1024xbf16>, vector<1024x128xbf16>, vector<8x128xf32> -> vector<8x128xf32>
      %c0_17 = arith.constant 0 : index
      %c0_18 = arith.constant 0 : index
      %22 = vector.load %arg6[%c0_17, %c0_18] : memref<1x128xf32, #tpu.memory_space<vmem>>, vector<1x128xf32>
      %23 = vector.broadcast %22 : vector<1x128xf32> to vector<8x128xf32>
      %24 = arith.addf %21, %23 : vector<8x128xf32>
      %c0_19 = arith.constant 0 : index
      %c0_20 = arith.constant 0 : index
      %25 = vector.load %arg7[%c0_19, %c0_20] : memref<8x128xf32, #tpu.memory_space<vmem>>, vector<8x128xf32>
      tpu.vector_store %arg7[%c0_19, %c0_20], %24 {strides = array<i32>} : memref<8x128xf32, #tpu.memory_space<vmem>>, vector<8x128xf32>,
    } else {
    }
    return
  }
  func.func @transform_0(%arg0: i32, %arg1: i32) -> (i32, i32) {
    %c0_i32 = arith.constant 0 : i32
    return %arg0, %arg1 : i32, i32
  }
  func.func @transform_1(%arg0: i32, %arg1: i32) -> (i32, i32) {
    %c0_i32 = arith.constant 0 : i32
    %c0_i32_0 = arith.constant 0 : i32
    return %arg1, %c0_i32 : i32, i32
  }
  func.func @transform_2(%arg0: i32, %arg1: i32) -> (i32, i32) {
    %c0_i32 = arith.constant 0 : i32
    %c0_i32_0 = arith.constant 0 : i32
    %c0_i32_1 = arith.constant 0 : i32
    return %c0_i32, %c0_i32_0 : i32, i32
  }
  func.func @transform_3(%arg0: i32, %arg1: i32) -> (i32, i32) {
    %c0_i32 = arith.constant 0 : i32
    %c0_i32_0 = arith.constant 0 : i32
    %c0_i32_1 = arith.constant 0 : i32
    return %c0_i32, %c0_i32_0 : i32, i32
  }
  func.func @transform_4(%arg0: i32, %arg1: i32) -> (i32, i32) {
    %c0_i32 = arith.constant 0 : i32
    %c0_i32_0 = arith.constant 0 : i32
    %c0_i32_1 = arith.constant 0 : i32
    return %c0_i32, %c0_i32_0 : i32, i32
  }
  func.func @transform_5(%arg0: i32, %arg1: i32) -> (i32, i32) {
    %c0_i32 = arith.constant 0 : i32
    %c0_i32_0 = arith.constant 0 : i32
    return %arg0, %c0_i32 : i32, i32
  }
}

</mosaic_0001>

<bundles_post_ra>
// kernel: cnn_forward.1
= control target key start
LH: loop header
LB: loop body
LE: loop exit
PB: predicated region body
PF: predicated region fallthrough
CT: control target
= control target key end

     0   :  { %s5871_s0 = inlined_call_operand.hbm [shape: f32[8,2048], index: 0, kind: input, shape index: {}]   ;;  %s5872_s1 = inlined_call_operand.hbm [shape: bf16[2048,1024], index: 1, kind: input, shape index: {}]   ;;  %s5873_s2 = inlined_call_operand.hbm [shape: f32[1,1024], index: 2, kind: input, shape index: {}]   ;;  %s5874_s3 = inlined_call_operand.hbm [shape: bf16[1024,128], index: 3, kind: input, shape index: {}]   ;;  %s5875_s4 = inlined_call_operand.hbm [shape: f32[1,128], index: 4, kind: input, shape index: {}]   ;;  %s5876_s5 = inlined_call_operand.hbm [shape: f32[8,128], index: 5, kind: output, shape index: {}]  }
   0x1   :  { %5877 = sst [smem:[#allocation18_spill]] %s5871_s0 }
   0x2   :  { %5878 = sst [smem:[#allocation19_spill]] %s5873_s2 }
   0x3   :  { %10 = vsyncpa [#allocation4], 0 }
   0x4   :  { %12 = vsyncpa [#allocation4 + $0x1], 0 }
   0x5   :  { %13 = vsyncpa [#allocation7], 0 }
   0x6   :  { %15 = vsyncpa [#allocation7 + $0x1], 0 }
   0x7   :  { %16 = vsyncpa [#allocation10], 0 }
   0x8   :  { %17 = vsyncpa [#allocation5], 0  ;;  %s5156_s18 = smov 0   ;;  %s5158_s19 = smov 0  }
   0x9   :  { %s5160_s20 = smov 0   ;;  %s5162_s21 = smov 0  }
   0xa   :  { %s5164_s22 = smov 0   ;;  %s5166_s23 = smov 0  }
   0xb LB: > { %s5185_s24 = sadd.s32 4294967295, %s5115_s23   ;;  %p57_p0 = scmp.ne.s32.totalorder %s5099_s19, %s5095_s18  ;;  %s5115_s23 = sphi %s5166_s23, %s23_s23   ;;  %s5111_s22 = sphi %s5164_s22, %s5889_s22   ;;  %s5107_s21 = sphi %s5162_s21, %s5888_s21   ;;  %s5103_s20 = sphi %s5160_s20, %s5887_s20   ;;  %s5099_s19 = sphi %s5158_s19, %s5886_s19   ;;  %s5095_s18 = sphi %s5156_s18, %s5885_s18  }
   0xc   : > { %p58_p1 = scmp.eq.s32.totalorder %s5185_s24, 0  ;;  %p3140_p2 = scmp.ge.s32.totalorder %s5115_s23, 1 }
   0xd   : > { %p183_p3 = scmp.lt.s32.totalorder %s5115_s23, 5  ;;  %s5880_s2 = sld [smem:[#allocation19_spill]] }
   0xe   : > { %p5193_p4 = por %p58_p1, %p57_p0  ;;  %s5117_s30 = smov [#allocation8]  }
   0xf   : > { %p5200_p5 = pnand %p3140_p2, %p183_p3  ;;  %s197_s6 = sshll.u32 %s5117_s30, 4  ;;  %s198_s6 = int_to_ptr.vmem [resolvable:$true] %s197_s6 }
  0x10   : > { %s206_s9 = sshll.u32 %s5874_s3, 4  ;;  %s5118_s11 = smov [#allocation9]   ;;  %s207_s9 = int_to_ptr.hbm [resolvable:$true] %s206_s9 }
  0x11   : > { %p4787_p6 = pneg %p5200_p5  ;;  %s208_s12 = sshll.u32 %s5118_s11, 4  ;;  %s209_s12 = int_to_ptr.vmem [resolvable:$true] %s208_s12 }
  0x12   : > { %s5119_s13 = smov 64   ;;  %s5120_s14 = smov 4  }
  0x13   : > { %s195_s28 = sshll.u32 %s5880_s2, 4  ;;  %p5211_p7 = pnand %p4787_p6, %p58_p1  ;;  %s196_s28 = int_to_ptr.hbm [resolvable:$true] %s195_s28 }
  0x14   : > { %s221_s17 = sshll.u32 %s5875_s4, 4  ;;  %s5121_s18 = smov [#allocation11]   ;;  %s222_s17 = int_to_ptr.hbm [resolvable:$true] %s221_s17 }
  0x15   : > { %4790 = dma.hbm_to_vmem [thread:$0]  (!%p5211_p7), %s196_s28, 128, %s198_s6, [#allocation7]  }
  0x16   : > { %4793 = dma.hbm_to_vmem [thread:$0]  (!%p5211_p7), %s207_s9, 8192, %s209_s12, [#allocation10], %s5119_s13, %s5119_s13, %s5120_s14  }
  0x17   : > { %s223_s26 = sshll.u32 %s5121_s18, 4  ;;  %s44_s27 = sadd.s32 1, %s5103_s20  ;;  %s224_s26 = int_to_ptr.vmem [resolvable:$true] %s223_s26 }
  0x18   : > { %4796 = dma.hbm_to_vmem [thread:$0]  (!%p5211_p7), %s222_s17, 16, %s224_s26, [#allocation10]  }
  0x19   : > { %s32_s28 = sadd.s32 1, %s5111_s22  ;;  %p51_p8 = scmp.ne.s32.totalorder %s5103_s20, %s5099_s19 }
  0x1a   : > { %p33_p9 = scmp.ge.s32.totalorder %s32_s28, 4  ;;  %p52_p10 = scmp.eq.s32.totalorder %s5115_s23, 0 }
  0x1b   : > { %p4807_p11 = scmp.lt.s32.totalorder %s5115_s23, 4  ;;  %s234_s30 = sand.u32 1, %s5103_s20  }
  0x1c   : > { %s5891_s28 = smov (%p33_p9, %s32_s28), 0  ;;  %p53_p12 = por %p52_p10, %p51_p8 }
  0x1d   : > { %s40_s6 = ssub.s32 %s5111_s22, %s5891_s28  ;;  %s3145_s7 = sshll.u32 %s234_s30, 5 }
  0x1e   : > { %p42_p13 = scmp.eq.s32.totalorder %s40_s6, 0  ;;  %s4444_s8 = sshll.u32 %s5111_s22, 5 }
  0x1f   : > { %s238_s9 = scalar_lea.vmem [#allocation3], %s3145_s7  ;;  %s5883_s0 = sld [smem:[#allocation18_spill]] }
  0x20   : > { %s249_s10 = sshll.u32 %s238_s9, 4  ;;  %p5244_p0 = pnand %p4807_p11, %p53_p12  ;;  %s250_s10 = int_to_ptr.vmem [resolvable:$true] %s249_s10 }
  0x21   : > { %s5237_s11 = scalar_select %p42_p13, %s5103_s20, %s44_s27  }
  0x22   : > { %s3148_s17 = sshll.u32 %s234_s30, 11  ;;  %s235_s18 = scalar_lea.sflag [#allocation4], %s234_s30 }
  0x23   : > { %s4446_s26 = sshll.u32 %s5111_s22, 11  ;;  %s260_s27 = scalar_lea.vmem [#allocation6], %s3148_s17 }
  0x24   : > { %s269_s6 = sshll.u32 %s260_s27, 4  ;;  %s256_s7 = sand.u32 1, %s5115_s23   ;;  %s270_s6 = int_to_ptr.vmem [resolvable:$true] %s269_s6 }
  0x25   : > { %s245_s14 = scalar_lea.hbm %s5883_s0, %s4444_s8  ;;  %s266_s12 = scalar_lea.hbm %s5872_s1, %s4446_s26 }
  0x26   : > { %s247_s15 = sshll.u32 %s245_s14, 4  ;;  %s267_s13 = sshll.u32 %s266_s12, 4  ;;  %s248_s15 = int_to_ptr.hbm [resolvable:$true] %s247_s15  ;;  %s268_s13 = int_to_ptr.hbm [resolvable:$true] %s267_s13 }
  0x27   : > { %4800 = dma.hbm_to_vmem [thread:$0]  (!%p5244_p0), %s248_s15, 512, %s250_s10, %s235_s18  }
  0x28   : > { %s257_s14 = scalar_lea.sflag [#allocation7], %s256_s7  ;;  %s5122_s0 = smov 512  }
  0x29   : > { %s5123_s2 = smov 32   ;;  %281 = sbr.rel (%p5200_p5) target bundleno = 716 (0x2cc), region = 40 }
  0x2a   : > { %4803 = dma.hbm_to_vmem [thread:$0]  (!%p5244_p0), %s268_s13, 32768, %s270_s6, %s257_s14, %s5122_s0, %s5122_s0, %s5123_s2  }
  0x2b   : > { %s283_s30 = sand.u32 (!%p5200_p5), 1, %s5099_s19  }
  0x2c   : > { %s3153_s10 = sshll.u32 (!%p5200_p5), %s283_s30, 5  ;;  %s284_s15 = scalar_lea.sflag (!%p5200_p5), [#allocation4], %s283_s30 }
  0x2d   : > { %s5260_s17 = scalar_lea.vmem (!%p5200_p5), [#allocation3], %s3153_s10 }
  0x2e   : > { %5074 = dma.done.wait (%p5193_p4), %s284_s15, 512  }
  0x2f   : > { %5076 = vsyncadd (%p5193_p4), %s284_s15, 4294966784  ;;  %s293_s18 = sand.u32 1, %s5185_s24   ;;  %s3154_s16 = sshll.u32 %s283_s30, 11 }
  0x30   : > { %s294_s0 = scalar_lea.sflag [#allocation7], %s293_s18  ;;  %s5267_s2 = scalar_lea.vmem [#allocation6], %s3154_s16 }
  0x31   : > { %5078 = dma.done.wait (%p5193_p4), %s294_s0, 32768  }
  0x32   : > { %5080 = vsyncadd (%p5193_p4), %s294_s0, 4294934528 }
  0x33   : > { %5082 = dma.done.wait (%p58_p1), [#allocation7], 128  }
  0x34   : > { %5084 = vsyncadd (%p58_p1), [#allocation7], 4294967168 }
  0x35   : > { %5086 = dma.done.wait (%p58_p1), [#allocation10], 8208  }
  0x36   : > { %5088 = vsyncadd (%p58_p1), [#allocation10], 4294959088  ;;  %p3158_p2 = scmp.ne.s32.totalorder %s5107_s21, 0 }
  0x38   : > { %345 = sbr.rel (%p3158_p2) target bundleno = 70 (0x46), region = 64 }
  0x3d   : > { %v5124_v0 = vmov 0.0  }
  0x3e   : > { %346 = vst [vmem:[#allocation2 + $0x30] sm:$0xff] %v5124_v0 }
  0x3f   : > { %347 = vst [vmem:[#allocation2] sm:$0xff] %v5124_v0 }
  0x40   : > { %348 = vst [vmem:[#allocation2 + $0x18] sm:$0xff] %v5124_v0 }
  0x41   : > { %349 = vst [vmem:[#allocation2 + $0x10] sm:$0xff] %v5124_v0 }
  0x42   : > { %350 = vst [vmem:[#allocation2 + $0x8] sm:$0xff] %v5124_v0 }
  0x43   : > { %351 = vst [vmem:[#allocation2 + $0x20] sm:$0xff] %v5124_v0 }
  0x44   : > { %352 = vst [vmem:[#allocation2 + $0x28] sm:$0xff] %v5124_v0 }
  0x45   : > { %353 = vst [vmem:[#allocation2 + $0x38] sm:$0xff] %v5124_v0 }
  0x46 PF: > { %v3385_v1 = vld [vmem:[%s5267_s2 + $0x1c0] sm:$0xf]  ;;  %p4183_p1 = scmp.ne.s32.totalorder %s5107_s21, 3 }
  0x47   : > { %v4507_v2 = vld [vmem:[%s5267_s2 + $0x1dc] sm:$0xf0] }
  0x48   : > { %v3641_v3 = vld [vmem:[%s5267_s2 + $0x3c0] sm:$0xf]  ;;  %v3386_v4 = vor.u32 %v4507_v2, %v3385_v1 }
  0x49   : > { %v4571_v5 = vld [vmem:[%s5267_s2 + $0x3dc] sm:$0xf0] }
  0x4a   : > { %v3897_v6 = vld [vmem:[%s5267_s2 + $0x5c0] sm:$0xf]  ;;  %v3642_v8 = vor.u32 %v4571_v5, %v3641_v3  ;;  %1906 = vmatpush.bf16.msra.mxu0 %v3386_v4 }
  0x4b   : > { %v4635_v7 = vld [vmem:[%s5267_s2 + $0x5dc] sm:$0xf0] }
  0x4c   : > { %v3898_v9 = vor.u32 %v4635_v7, %v3897_v6  ;;  %v4153_v10 = vld [vmem:[%s5267_s2 + $0x7c0] sm:$0xf]  ;;  %1919 = vmatpush.bf16.msra.mxu1 %v3642_v8 }
  0x4d   : > { %v4699_v11 = vld [vmem:[%s5267_s2 + $0x7dc] sm:$0xf0] }
  0x4e   : > { %v3353_v12 = vld [vmem:[%s5267_s2 + $0x180] sm:$0xf]  ;;  %v4154_v13 = vor.u32 %v4699_v11, %v4153_v10  ;;  %1932 = vmatpush.bf16.msra.mxu2 %v3898_v9 }
  0x4f   : > { %v4499_v14 = vld [vmem:[%s5267_s2 + $0x19c] sm:$0xf0] }
  0x50   : > { %v3609_v15 = vld [vmem:[%s5267_s2 + $0x380] sm:$0xf]  ;;  %v3354_v17 = vor.u32 %v4499_v14, %v3353_v12  ;;  %1945 = vmatpush.bf16.msra.mxu3 %v4154_v13 }
  0x51   : > { %v4563_v16 = vld [vmem:[%s5267_s2 + $0x39c] sm:$0xf0] }
  0x52   : > { %v3610_v18 = vor.u32 %v4563_v16, %v3609_v15  ;;  %v3865_v19 = vld [vmem:[%s5267_s2 + $0x580] sm:$0xf]  ;;  %1907 = vmatpush.bf16.msra.mxu0 %v3354_v17 }
  0x53   : > { %v4627_v20 = vld [vmem:[%s5267_s2 + $0x59c] sm:$0xf0] }
  0x54   : > { %v4121_v21 = vld [vmem:[%s5267_s2 + $0x780] sm:$0xf]  ;;  %v3866_v22 = vor.u32 %v4627_v20, %v3865_v19  ;;  %1920 = vmatpush.bf16.msra.mxu1 %v3610_v18 }
  0x55   : > { %v4691_v23 = vld [vmem:[%s5267_s2 + $0x79c] sm:$0xf0] }
  0x56   : > { %v3321_v24 = vld [vmem:[%s5267_s2 + $0x140] sm:$0xf]  ;;  %v4122_v26 = vor.u32 %v4691_v23, %v4121_v21  ;;  %1933 = vmatpush.bf16.msra.mxu2 %v3866_v22 }
  0x57   : > { %v4491_v25 = vld [vmem:[%s5267_s2 + $0x15c] sm:$0xf0] }
  0x58   : > { %v3577_v27 = vld [vmem:[%s5267_s2 + $0x340] sm:$0xf]  ;;  %v3322_v30 = vor.u32 %v4491_v25, %v3321_v24  ;;  %1946 = vmatpush.bf16.msra.mxu3 %v4122_v26 }
  0x59   : > { %v4555_v28 = vld [vmem:[%s5267_s2 + $0x35c] sm:$0xf0] }
  0x5a   : > { %v3833_v29 = vld [vmem:[%s5267_s2 + $0x540] sm:$0xf]  ;;  %v3578_v34 = vor.u32 %v4555_v28, %v3577_v27  ;;  %1908 = vmatpush.bf16.msra.mxu0 %v3322_v30  ;;  %v3387_v30 = vld [vmem:[%s5267_s2 + $0x1e0] sm:$0xf0] }
  0x5b   : > { %v4619_v31 = vld [vmem:[%s5267_s2 + $0x55c] sm:$0xf0] }
  0x5c   : > { %v4089_v32 = vld [vmem:[%s5267_s2 + $0x740] sm:$0xf]  ;;  %v3834_v35 = vor.u32 %v4619_v31, %v3833_v29  ;;  %1921 = vmatpush.bf16.msra.mxu1 %v3578_v34  ;;  %v4503_v29 = vld [vmem:[%s5267_s2 + $0x1c4] sm:$0xf] }
  0x5d   : > { %v4683_v33 = vld [vmem:[%s5267_s2 + $0x75c] sm:$0xf0]  ;;  %v4567_v31 = vld [vmem:[%s5267_s2 + $0x3c4] sm:$0xf] }
  0x5e   : > { %v3289_v36 = vld [vmem:[%s5267_s2 + $0x100] sm:$0xf]  ;;  %v4090_v39 = vor.u32 %v4683_v33, %v4089_v32  ;;  %1934 = vmatpush.bf16.msra.mxu2 %v3834_v35  ;;  %v3643_v33 = vld [vmem:[%s5267_s2 + $0x3e0] sm:$0xf0] }
  0x5f   : > { %v4483_v37 = vld [vmem:[%s5267_s2 + $0x11c] sm:$0xf0]  ;;  %v4631_v34 = vld [vmem:[%s5267_s2 + $0x5c4] sm:$0xf] }
  0x60   : > { %v3545_v38 = vld [vmem:[%s5267_s2 + $0x300] sm:$0xf]  ;;  %v3290_v45 = vor.u32 %v4483_v37, %v3289_v36  ;;  %1947 = vmatpush.bf16.msra.mxu3 %v4090_v39  ;;  %v3899_v35 = vld [vmem:[%s5267_s2 + $0x5e0] sm:$0xf0] }
  0x61   : > { %v4547_v40 = vld [vmem:[%s5267_s2 + $0x31c] sm:$0xf0]  ;;  %v4155_v39 = vld [vmem:[%s5267_s2 + $0x7e0] sm:$0xf0] }
  0x62   : > { %v3801_v41 = vld [vmem:[%s5267_s2 + $0x500] sm:$0xf]  ;;  %v3546_v46 = vor.u32 %v4547_v40, %v3545_v38  ;;  %1909 = vmatpush.bf16.msra.mxu0 %v3290_v45  ;;  %v4695_v38 = vld [vmem:[%s5267_s2 + $0x7c4] sm:$0xf] }
  0x63   : > { %v4611_v42 = vld [vmem:[%s5267_s2 + $0x51c] sm:$0xf0]  ;;  %v3355_v45 = vld [vmem:[%s5267_s2 + $0x1a0] sm:$0xf0] }
  0x64   : > { %v4057_v43 = vld [vmem:[%s5267_s2 + $0x700] sm:$0xf]  ;;  %v3802_v47 = vor.u32 %v4611_v42, %v3801_v41  ;;  %1922 = vmatpush.bf16.msra.mxu1 %v3546_v46  ;;  %v3390_v41 = vor.u32 %v4503_v29, %v3387_v30  ;;  %v3646_v42 = vor.u32 %v4567_v31, %v3643_v33  ;;  %v4559_v46 = vld [vmem:[%s5267_s2 + $0x384] sm:$0xf] }
  0x65   : > { %v4675_v44 = vld [vmem:[%s5267_s2 + $0x71c] sm:$0xf0]  ;;  %v4599_v29 = vld [vmem:[%s5267_s2 + $0x4c4] sm:$0xf] }
  0x66   : > { %v3257_v48 = vld [vmem:[%s5267_s2 + $0xc0] sm:$0xf]  ;;  %v4058_v51 = vor.u32 %v4675_v44, %v4057_v43  ;;  %1935 = vmatpush.bf16.msra.mxu2 %v3802_v47  ;;  %v3902_v43 = vor.u32 %v4631_v34, %v3899_v35  ;;  %v4495_v44 = vld [vmem:[%s5267_s2 + $0x184] sm:$0xf]  ;;  %v4158_v47 = vor.u32 %v4695_v38, %v4155_v39 }
  0x67   : > { %v4475_v49 = vld [vmem:[%s5267_s2 + $0xdc] sm:$0xf0]  ;;  %v3771_v30 = vld [vmem:[%s5267_s2 + $0x4e0] sm:$0xf0] }
  0x68   : > { %v3513_v50 = vld [vmem:[%s5267_s2 + $0x2c0] sm:$0xf]  ;;  %v3258_v57 = vor.u32 %v4475_v49, %v3257_v48  ;;  %1948 = vmatpush.bf16.msra.mxu3 %v4058_v51  ;;  %v3611_v48 = vld [vmem:[%s5267_s2 + $0x3a0] sm:$0xf0]  ;;  %v3774_v35 = vor.u32 %v4599_v29, %v3771_v30  ;;  %v3873_v29 = vld [vmem:[%s5267_s2 + $0x588] sm:$0xf] }
  0x69   : > { %v4539_v52 = vld [vmem:[%s5267_s2 + $0x2dc] sm:$0xf0]  ;;  %v4623_v49 = vld [vmem:[%s5267_s2 + $0x584] sm:$0xf]  ;;  %v4628_v30 = vld [vmem:[%s5267_s2 + $0x5a4] sm:$0xf0] }
  0x6a   : > { %v3769_v53 = vld [vmem:[%s5267_s2 + $0x4c0] sm:$0xf]  ;;  %v3514_v58 = vor.u32 %v4539_v52, %v3513_v50  ;;  %1910 = vmatpush.bf16.msra.mxu0 %v3258_v57  ;;  %v3867_v50 = vld [vmem:[%s5267_s2 + $0x5a0] sm:$0xf0] }
  0x6b   : > { %v4603_v54 = vld [vmem:[%s5267_s2 + $0x4dc] sm:$0xf0]  ;;  %v4687_v51 = vld [vmem:[%s5267_s2 + $0x784] sm:$0xf] }
  0x6c   : > { %v4025_v55 = vld [vmem:[%s5267_s2 + $0x6c0] sm:$0xf]  ;;  %v3770_v59 = vor.u32 %v4603_v54, %v3769_v53  ;;  %1923 = vmatpush.bf16.msra.mxu1 %v3514_v58  ;;  %v4123_v52 = vld [vmem:[%s5267_s2 + $0x7a0] sm:$0xf0]  ;;  %v3358_v53 = vor.u32 %v4495_v44, %v3355_v45 }
  0x6d   : > { %v4667_v56 = vld [vmem:[%s5267_s2 + $0x6dc] sm:$0xf0]  ;;  %v4487_v54 = vld [vmem:[%s5267_s2 + $0x144] sm:$0xf] }
  0x6e   : > { %v3225_v60 = vld [vmem:[%s5267_s2 + $0x80] sm:$0xf]  ;;  %v4026_v63 = vor.u32 %v4667_v56, %v4025_v55  ;;  %1936 = vmatpush.bf16.msra.mxu2 %v3770_v59  ;;  %v3614_v55 = vor.u32 %v4559_v46, %v3611_v48  ;;  %v3870_v56 = vor.u32 %v4623_v49, %v3867_v50  ;;  %v3323_v57 = vld [vmem:[%s5267_s2 + $0x160] sm:$0xf0] }
  0x6f   : > { %v4467_v61 = vld [vmem:[%s5267_s2 + $0x9c] sm:$0xf0]  ;;  %v4551_v58 = vld [vmem:[%s5267_s2 + $0x344] sm:$0xf] }
  0x70   : > { %v3481_v62 = vld [vmem:[%s5267_s2 + $0x280] sm:$0xf]  ;;  %v3226_v5 = vor.u32 %v4467_v61, %v3225_v60  ;;  %1949 = vmatpush.bf16.msra.mxu3 %v4026_v63  ;;  %v3579_v59 = vld [vmem:[%s5267_s2 + $0x360] sm:$0xf0]  ;;  %v4126_v60 = vor.u32 %v4687_v51, %v4123_v52 }
  0x71   : > { %v4531_v0 = vld [vmem:[%s5267_s2 + $0x29c] sm:$0xf0]  ;;  %v4615_v61 = vld [vmem:[%s5267_s2 + $0x544] sm:$0xf] }
  0x72   : > { %v3737_v1 = vld [vmem:[%s5267_s2 + $0x480] sm:$0xf]  ;;  %v3482_v6 = vor.u32 %v4531_v0, %v3481_v62  ;;  %1911 = vmatpush.bf16.msra.mxu0 %v3226_v5  ;;  %v3835_v62 = vld [vmem:[%s5267_s2 + $0x560] sm:$0xf0] }
  0x73   : > { %v4595_v2 = vld [vmem:[%s5267_s2 + $0x49c] sm:$0xf0]  ;;  %v4679_v63 = vld [vmem:[%s5267_s2 + $0x744] sm:$0xf]  ;;  %v3838_v5 = vor.u32 %v4615_v61, %v3835_v62 }
  0x74   : > { %v3993_v3 = vld [vmem:[%s5267_s2 + $0x680] sm:$0xf]  ;;  %v3738_v7 = vor.u32 %v4595_v2, %v3737_v1  ;;  %1924 = vmatpush.bf16.msra.mxu1 %v3482_v6  ;;  %v4091_v0 = vld [vmem:[%s5267_s2 + $0x760] sm:$0xf0]  ;;  %v3326_v1 = vor.u32 %v4487_v54, %v3323_v57  ;;  %v3582_v2 = vor.u32 %v4551_v58, %v3579_v59 }
  0x75   : > { %v4659_v4 = vld [vmem:[%s5267_s2 + $0x69c] sm:$0xf0]  ;;  %v4479_v6 = vld [vmem:[%s5267_s2 + $0x104] sm:$0xf] }
  0x76   : > { %v3193_v8 = vld [vmem:[%s5267_s2 + $0x40] sm:$0xf]  ;;  %v3994_v11 = vor.u32 %v4659_v4, %v3993_v3  ;;  %1937 = vmatpush.bf16.msra.mxu2 %v3738_v7  ;;  %v364_v3 = vld [vmem:[%s5260_s17 + $0x10] sm:$0xff]  ;;  %v365_v4 = vld [vmem:[%s5260_s17 + $0x18] sm:$0xff] }
  0x77   : > { %v4459_v9 = vld [vmem:[%s5267_s2 + $0x5c] sm:$0xf0]  ;;  %v3291_v7 = vld [vmem:[%s5267_s2 + $0x120] sm:$0xf0] }
  0x78   : > { %v3449_v10 = vld [vmem:[%s5267_s2 + $0x240] sm:$0xf]  ;;  %v3194_v17 = vor.u32 %v4459_v9, %v3193_v8  ;;  %1950 = vmatpush.bf16.msra.mxu3 %v3994_v11  ;;  %v4543_v8 = vld [vmem:[%s5267_s2 + $0x304] sm:$0xf]  ;;  %v5375_v9 = vpack.c.bf16 %v364_v3, %v364_v3  ;;  %v4094_v11 = vor.u32 %v4679_v63, %v4091_v0 }
  0x79   : > { %v4523_v12 = vld [vmem:[%s5267_s2 + $0x25c] sm:$0xf0]  ;;  %v4663_v31 = vld [vmem:[%s5267_s2 + $0x6c4] sm:$0xf] }
  0x7a   : > { %v3705_v13 = vld [vmem:[%s5267_s2 + $0x440] sm:$0xf]  ;;  %v3450_v20 = vor.u32 %v4523_v12, %v3449_v10  ;;  %1912 = vmatpush.bf16.msra.mxu0 %v3194_v17  ;;  %v5377_v10 = vpack.c.bf16 %v365_v4, %v365_v4  ;;  %v3547_v12 = vld [vmem:[%s5267_s2 + $0x320] sm:$0xf0] }
  0x7b   : > { %v4587_v14 = vld [vmem:[%s5267_s2 + $0x45c] sm:$0xf0]  ;;  %v4527_v38 = vld [vmem:[%s5267_s2 + $0x284] sm:$0xf] }
  0x7c   : > { %v3961_v15 = vld [vmem:[%s5267_s2 + $0x640] sm:$0xf]  ;;  %v3706_v21 = vor.u32 %v4587_v14, %v3705_v13  ;;  %1925 = vmatpush.bf16.msra.mxu1 %v3450_v20  ;;  %v4607_v13 = vld [vmem:[%s5267_s2 + $0x504] sm:$0xf]  ;;  %v363_v20 = vld [vmem:[%s5260_s17 + $0x8] sm:$0xff] }
  0x7d   : > { %v4651_v16 = vld [vmem:[%s5267_s2 + $0x65c] sm:$0xf0]  ;;  %v3803_v14 = vld [vmem:[%s5267_s2 + $0x520] sm:$0xf0] }
  0x7e   : > { %v3161_v18 = vld [vmem:[%s5267_s2] sm:$0xf]  ;;  %v3962_v25 = vor.u32 %v4651_v16, %v3961_v15  ;;  %1938 = vmatpush.bf16.msra.mxu2 %v3706_v21  ;;  %v4671_v15 = vld [vmem:[%s5267_s2 + $0x704] sm:$0xf]  ;;  %v3550_v21 = vor.u32 %v4543_v8, %v3547_v12  ;;  %v3905_v12 = vld [vmem:[%s5267_s2 + $0x5c8] sm:$0xf] }
  0x7f   : > { %v4451_v19 = vld [vmem:[%s5267_s2 + $0x1c] sm:$0xf0]  ;;  %v4059_v16 = vld [vmem:[%s5267_s2 + $0x720] sm:$0xf0] }
  0x80   : > { %v3417_v22 = vld [vmem:[%s5267_s2 + $0x200] sm:$0xf]  ;;  %v3162_v32 = vor.u32 %v4451_v19, %v3161_v18  ;;  %1951 = vmatpush.bf16.msra.mxu3 %v3962_v25  ;;  %v3294_v18 = vor.u32 %v4479_v6, %v3291_v7  ;;  %v4535_v25 = vld [vmem:[%s5267_s2 + $0x2c4] sm:$0xf]  ;;  %v4508_v6 = vld [vmem:[%s5267_s2 + $0x1e4] sm:$0xf0] }
  0x81   : > { %v4515_v23 = vld [vmem:[%s5267_s2 + $0x21c] sm:$0xf0]  ;;  %v3995_v44 = vld [vmem:[%s5267_s2 + $0x6a0] sm:$0xf0]  ;;  %v3649_v7 = vld [vmem:[%s5267_s2 + $0x3c8] sm:$0xf] }
  0x82   : > { %v3673_v24 = vld [vmem:[%s5267_s2 + $0x400] sm:$0xf]  ;;  %v3418_v36 = vor.u32 %v4515_v23, %v3417_v22  ;;  %1913 = vmatpush.bf16.msra.mxu0 %v3162_v32  ;;  %v3806_v22 = vor.u32 %v4607_v13, %v3803_v14  ;;  %v4471_v23 = vld [vmem:[%s5267_s2 + $0xc4] sm:$0xf]  ;;  %v4636_v13 = vld [vmem:[%s5267_s2 + $0x5e4] sm:$0xf0] }
  0x83   : > { %v4579_v26 = vld [vmem:[%s5267_s2 + $0x41c] sm:$0xf0]  ;;  %v4027_v32 = vld [vmem:[%s5267_s2 + $0x6e0] sm:$0xf0] }
  0x84   : > { %v3929_v27 = vld [vmem:[%s5267_s2 + $0x600] sm:$0xf]  ;;  %v3674_v37 = vor.u32 %v4579_v26, %v3673_v24  ;;  %1926 = vmatpush.bf16.msra.mxu1 %v3418_v36  ;;  %v3259_v24 = vld [vmem:[%s5267_s2 + $0xe0] sm:$0xf0]  ;;  %v5393_v26 = vpack.c.bf16 %v363_v20, %v363_v20  ;;  %v4030_v39 = vor.u32 %v4663_v31, %v4027_v32  ;;  %v4129_v31 = vld [vmem:[%s5267_s2 + $0x788] sm:$0xf] }
  0x85   : > { %v4643_v28 = vld [vmem:[%s5267_s2 + $0x61c] sm:$0xf0]  ;;  %v3262_v33 = vor.u32 %v4471_v23, %v3259_v24  ;;  %v4463_v36 = vld [vmem:[%s5267_s2 + $0x84] sm:$0xf]  ;;  %v3361_v23 = vld [vmem:[%s5267_s2 + $0x188] sm:$0xf] }
  0x86   : > { %v3930_v40 = vor.u32 %v4643_v28, %v3929_v27  ;;  %1939 = vmatpush.bf16.msra.mxu2 %v3674_v37  ;;  %1958 = vmatpush.bf16.msrb.mxu0 %v3390_v41  ;;  %v362_v17 = vld [vmem:[%s5260_s17] sm:$0xff]  ;;  %v4062_v27 = vor.u32 %v4671_v15, %v4059_v16  ;;  %v4161_v16 = vld [vmem:[%s5267_s2 + $0x7c8] sm:$0xf] }
  0x87   : > { %v5387_v19 = vpack.c.bf16 %v362_v17, %v362_v17  ;;  %v3515_v28 = vld [vmem:[%s5267_s2 + $0x2e0] sm:$0xf0]  ;;  %1927 = vmatmul.bf16.vlgmr.msra.gmra.mxu1 %v5393_v26  ;;  %v4700_v17 = vld [vmem:[%s5267_s2 + $0x7e4] sm:$0xf0] }
  0x88   : > { %1952 = vmatpush.bf16.msra.mxu3 %v3930_v40  ;;  %1971 = vmatpush.bf16.msrb.mxu1 %v3646_v42  ;;  %v3518_v34 = vor.u32 %v4535_v25, %v3515_v28  ;;  %v3227_v37 = vld [vmem:[%s5267_s2 + $0xa0] sm:$0xf0]  ;;  %v4500_v24 = vld [vmem:[%s5267_s2 + $0x1a4] sm:$0xf0] }
  0x89   : > { %1940 = vmatmul.bf16.vlgmr.msra.gmra.mxu2 %v5375_v9  ;;  %1914 = vmatmul.bf16.vlgmr.msra.gmra.mxu0 %v5387_v19  ;;  %v3483_v40 = vld [vmem:[%s5267_s2 + $0x2a0] sm:$0xf0]  ;;  %v3230_v45 = vor.u32 %v4463_v36, %v3227_v37  ;;  %v3617_v25 = vld [vmem:[%s5267_s2 + $0x388] sm:$0xf] }
  0x8a   : > { %1984 = vmatpush.bf16.msrb.mxu2 %v3902_v43  ;;  %1959 = vmatpush.bf16.msrb.mxu0 %v3358_v53  ;;  %v4591_v41 = vld [vmem:[%s5267_s2 + $0x484] sm:$0xf]  ;;  %v3486_v46 = vor.u32 %v4527_v38, %v3483_v40  ;;  %v4564_v28 = vld [vmem:[%s5267_s2 + $0x3a4] sm:$0xf0] }
  0x8b   : > { %1953 = vmatmul.bf16.vlgmr.msra.gmra.mxu3 %v5377_v10  ;;  %v3739_v42 = vld [vmem:[%s5267_s2 + $0x4a0] sm:$0xf0]  ;;  %v4692_v32 = vld [vmem:[%s5267_s2 + $0x7a4] sm:$0xf0] }
  0x8c   : > { %1997 = vmatpush.bf16.msrb.mxu3 %v4158_v47  ;;  %1972 = vmatpush.bf16.msrb.mxu1 %v3614_v55  ;;  %v4655_v43 = vld [vmem:[%s5267_s2 + $0x684] sm:$0xf]  ;;  %v3742_v47 = vor.u32 %v4591_v41, %v3739_v42  ;;  %v3329_v36 = vld [vmem:[%s5267_s2 + $0x148] sm:$0xf] }
  0x8d   : > { %v4455_v48 = vld [vmem:[%s5267_s2 + $0x44] sm:$0xf]  ;;  %v3998_v51 = vor.u32 %v4655_v43, %v3995_v44  ;;  %v4492_v37 = vld [vmem:[%s5267_s2 + $0x164] sm:$0xf0] }
  0x8e   : > { %1985 = vmatpush.bf16.msrb.mxu2 %v3870_v56  ;;  %1960 = vmatpush.bf16.msrb.mxu0 %v3326_v1  ;;  %v3195_v49 = vld [vmem:[%s5267_s2 + $0x60] sm:$0xf0]  ;;  %v3585_v38 = vld [vmem:[%s5267_s2 + $0x348] sm:$0xf] }
  0x8f   : > { %v4519_v50 = vld [vmem:[%s5267_s2 + $0x244] sm:$0xf]  ;;  %v3198_v57 = vor.u32 %v4455_v48, %v3195_v49  ;;  %v4556_v40 = vld [vmem:[%s5267_s2 + $0x364] sm:$0xf0] }
  0x90   : > { %1998 = vmatpush.bf16.msrb.mxu3 %v4126_v60  ;;  %1973 = vmatpush.bf16.msrb.mxu1 %v3582_v2  ;;  %v3451_v52 = vld [vmem:[%s5267_s2 + $0x260] sm:$0xf0]  ;;  %v3841_v41 = vld [vmem:[%s5267_s2 + $0x548] sm:$0xf] }
  0x91   : > { %v4583_v53 = vld [vmem:[%s5267_s2 + $0x444] sm:$0xf]  ;;  %v3454_v60 = vor.u32 %v4519_v50, %v3451_v52  ;;  %v4620_v42 = vld [vmem:[%s5267_s2 + $0x564] sm:$0xf0] }
  0x92   : > { %1986 = vmatpush.bf16.msrb.mxu2 %v3838_v5  ;;  %1961 = vmatpush.bf16.msrb.mxu0 %v3294_v18  ;;  %v3707_v54 = vld [vmem:[%s5267_s2 + $0x460] sm:$0xf0]  ;;  %v3393_v5 = vld [vmem:[%s5267_s2 + $0x1c8] sm:$0xf] }
  0x93   : > { %v4647_v55 = vld [vmem:[%s5267_s2 + $0x644] sm:$0xf]  ;;  %v3710_v61 = vor.u32 %v4583_v53, %v3707_v54  ;;  %v3394_v20 = vor.u32 %v4508_v6, %v3393_v5  ;;  %v4097_v43 = vld [vmem:[%s5267_s2 + $0x748] sm:$0xf] }
  0x94   : > { %1999 = vmatpush.bf16.msrb.mxu3 %v4094_v11  ;;  %1974 = vmatpush.bf16.msrb.mxu1 %v3550_v21  ;;  %v3963_v56 = vld [vmem:[%s5267_s2 + $0x660] sm:$0xf0]  ;;  %v4572_v11 = vld [vmem:[%s5267_s2 + $0x3e4] sm:$0xf0] }
  0x95   : > { %v4447_v58 = vld [vmem:[%s5267_s2 + $0x4] sm:$0xf]  ;;  %v3966_v1 = vor.u32 %v4647_v55, %v3963_v56  ;;  %v3650_v21 = vor.u32 %v4572_v11, %v3649_v7  ;;  %v4684_v44 = vld [vmem:[%s5267_s2 + $0x764] sm:$0xf0] }
  0x96   : > { %1987 = vmatpush.bf16.msrb.mxu2 %v3806_v22  ;;  %1962 = vmatpush.bf16.msrb.mxu0 %v3262_v33  ;;  %v3163_v59 = vld [vmem:[%s5267_s2 + $0x20] sm:$0xf0]  ;;  %v3906_v22 = vor.u32 %v4636_v13, %v3905_v12  ;;  %v3362_v33 = vor.u32 %v4500_v24, %v3361_v23  ;;  %v3297_v48 = vld [vmem:[%s5267_s2 + $0x108] sm:$0xf] }
  0x97   : > { %v4511_v62 = vld [vmem:[%s5267_s2 + $0x204] sm:$0xf]  ;;  %v3166_v8 = vor.u32 %v4447_v58, %v3163_v59  ;;  %v4484_v49 = vld [vmem:[%s5267_s2 + $0x124] sm:$0xf0] }
  0x98   : > { %2000 = vmatpush.bf16.msrb.mxu3 %v4062_v27  ;;  %1975 = vmatpush.bf16.msrb.mxu1 %v3518_v34  ;;  %v3419_v63 = vld [vmem:[%s5267_s2 + $0x220] sm:$0xf0]  ;;  %v4162_v27 = vor.u32 %v4700_v17, %v4161_v16  ;;  %v3618_v34 = vor.u32 %v4564_v28, %v3617_v25  ;;  %v3553_v50 = vld [vmem:[%s5267_s2 + $0x308] sm:$0xf] }
  0x99   : > { %v4575_v0 = vld [vmem:[%s5267_s2 + $0x404] sm:$0xf]  ;;  %v3422_v14 = vor.u32 %v4511_v62, %v3419_v63  ;;  %v4548_v52 = vld [vmem:[%s5267_s2 + $0x324] sm:$0xf0] }
  0x9a   : > { %1988 = vmatpush.bf16.msrb.mxu2 %v3774_v35  ;;  %1963 = vmatpush.bf16.msrb.mxu0 %v3230_v45  ;;  %v3675_v2 = vld [vmem:[%s5267_s2 + $0x420] sm:$0xf0]  ;;  %v3874_v35 = vor.u32 %v4628_v30, %v3873_v29  ;;  %v3330_v45 = vor.u32 %v4492_v37, %v3329_v36  ;;  %v3809_v53 = vld [vmem:[%s5267_s2 + $0x508] sm:$0xf]  ;;  %v3554_v58 = vor.u32 %v4548_v52, %v3553_v50  ;;  %v4632_v50 = vld [vmem:[%s5267_s2 + $0x5cc] sm:$0xf] }
  0x9b   : > { %v4639_v3 = vld [vmem:[%s5267_s2 + $0x604] sm:$0xf]  ;;  %v3678_v15 = vor.u32 %v4575_v0, %v3675_v2  ;;  %v4612_v54 = vld [vmem:[%s5267_s2 + $0x524] sm:$0xf0] }
  0x9c   : > { %2001 = vmatpush.bf16.msrb.mxu3 %v4030_v39  ;;  %1976 = vmatpush.bf16.msrb.mxu1 %v3486_v46  ;;  %v3931_v4 = vld [vmem:[%s5267_s2 + $0x620] sm:$0xf0]  ;;  %v4130_v39 = vor.u32 %v4692_v32, %v4129_v31  ;;  %v3586_v46 = vor.u32 %v4556_v40, %v3585_v38  ;;  %v4065_v55 = vld [vmem:[%s5267_s2 + $0x708] sm:$0xf]  ;;  %v3810_v59 = vor.u32 %v4612_v54, %v3809_v53  ;;  %v4696_v54 = vld [vmem:[%s5267_s2 + $0x7cc] sm:$0xf] }
  0x9d   : > { %v3934_v18 = vor.u32 %v4639_v3, %v3931_v4  ;;  %v4676_v56 = vld [vmem:[%s5267_s2 + $0x724] sm:$0xf0] }
  0x9e   : > { %1989 = vmatpush.bf16.msrb.mxu2 %v3742_v47  ;;  %1964 = vmatpush.bf16.msrb.mxu0 %v3198_v57  ;;  %v3842_v47 = vor.u32 %v4620_v42, %v3841_v41  ;;  %v3298_v57 = vor.u32 %v4484_v49, %v3297_v48  ;;  %v3521_v62 = vld [vmem:[%s5267_s2 + $0x2c8] sm:$0xf]  ;;  %v4066_v63 = vor.u32 %v4676_v56, %v4065_v55  ;;  %v3651_v49 = vld [vmem:[%s5267_s2 + $0x3e8] sm:$0xf0] }
  0x9f   : > { %v4540_v0 = vld [vmem:[%s5267_s2 + $0x2e4] sm:$0xf0]  ;;  %v4163_v55 = vld [vmem:[%s5267_s2 + $0x7e8] sm:$0xf0] }
  0xa0   : > { %2002 = vmatpush.bf16.msrb.mxu3 %v3998_v51  ;;  %1977 = vmatpush.bf16.msrb.mxu1 %v3454_v60  ;;  %v4098_v51 = vor.u32 %v4684_v44, %v4097_v43  ;;  %v3265_v60 = vld [vmem:[%s5267_s2 + $0xc8] sm:$0xf]  ;;  %v3522_v6 = vor.u32 %v4540_v0, %v3521_v62  ;;  %v4560_v62 = vld [vmem:[%s5267_s2 + $0x38c] sm:$0xf] }
  0xa1   : > { %v4604_v2 = vld [vmem:[%s5267_s2 + $0x4e4] sm:$0xf0]  ;;  %v3619_v0 = vld [vmem:[%s5267_s2 + $0x3a8] sm:$0xf0] }
  0xa2   : > { %1990 = vmatpush.bf16.msrb.mxu2 %v3710_v61  ;;  %1965 = vmatpush.bf16.msrb.mxu0 %v3166_v8  ;;  %v4476_v61 = vld [vmem:[%s5267_s2 + $0xe4] sm:$0xf0] }
  0xa3   : > { %v4033_v3 = vld [vmem:[%s5267_s2 + $0x6c8] sm:$0xf]  ;;  %v3266_v5 = vor.u32 %v4476_v61, %v3265_v60  ;;  %v4496_v60 = vld [vmem:[%s5267_s2 + $0x18c] sm:$0xf] }
  0xa4   : > { %2003 = vmatpush.bf16.msrb.mxu3 %v3966_v1  ;;  %1978 = vmatpush.bf16.msrb.mxu1 %v3422_v14  ;;  %v3777_v1 = vld [vmem:[%s5267_s2 + $0x4c8] sm:$0xf]  ;;  %v3363_v61 = vld [vmem:[%s5267_s2 + $0x1a8] sm:$0xf0] }
  0xa5   : > { %1966 = vmatmul.bf16.vlgmr.msrb.gmra.mxu0 %v5387_v19  ;;  %v4668_v4 = vld [vmem:[%s5267_s2 + $0x6e4] sm:$0xf0]  ;;  %v3778_v7 = vor.u32 %v4604_v2, %v3777_v1  ;;  %v4624_v1 = vld [vmem:[%s5267_s2 + $0x58c] sm:$0xf] }
  0xa6   : > { %1991 = vmatpush.bf16.msrb.mxu2 %v3678_v15  ;;  %2010 = vmatpush.bf16.msra.mxu0 %v3394_v20  ;;  %v3233_v8 = vld [vmem:[%s5267_s2 + $0x88] sm:$0xf]  ;;  %v4034_v13 = vor.u32 %v4668_v4, %v4033_v3  ;;  %v3875_v2 = vld [vmem:[%s5267_s2 + $0x5a8] sm:$0xf0] }
  0xa7   : > { %1979 = vmatmul.bf16.vlgmr.msrb.gmra.mxu1 %v5393_v26  ;;  %v4468_v11 = vld [vmem:[%s5267_s2 + $0xa4] sm:$0xf0]  ;;  %v4688_v3 = vld [vmem:[%s5267_s2 + $0x78c] sm:$0xf] }
  0xa8   : > { %2004 = vmatpush.bf16.msrb.mxu3 %v3934_v18  ;;  %2023 = vmatpush.bf16.msra.mxu1 %v3650_v21  ;;  %v3489_v12 = vld [vmem:[%s5267_s2 + $0x288] sm:$0xf]  ;;  %v3234_v20 = vor.u32 %v4468_v11, %v3233_v8  ;;  %v4131_v4 = vld [vmem:[%s5267_s2 + $0x7a8] sm:$0xf0] }
  0xa9   : > { %1992 = vmatmul.bf16.vlgmr.msrb.gmra.mxu2 %v5375_v9  ;;  %v4532_v14 = vld [vmem:[%s5267_s2 + $0x2a4] sm:$0xf0]  ;;  %v4488_v8 = vld [vmem:[%s5267_s2 + $0x14c] sm:$0xf] }
  0xaa   : > { %2036 = vmatpush.bf16.msra.mxu2 %v3906_v22  ;;  %2011 = vmatpush.bf16.msra.mxu0 %v3362_v33  ;;  %v3745_v15 = vld [vmem:[%s5267_s2 + $0x488] sm:$0xf]  ;;  %v3490_v21 = vor.u32 %v4532_v14, %v3489_v12  ;;  %v3331_v11 = vld [vmem:[%s5267_s2 + $0x168] sm:$0xf0] }
  0xab   : > { %2005 = vmatmul.bf16.vlgmr.msrb.gmra.mxu3 %v5377_v10  ;;  %v4596_v16 = vld [vmem:[%s5267_s2 + $0x4a4] sm:$0xf0]  ;;  %v4552_v12 = vld [vmem:[%s5267_s2 + $0x34c] sm:$0xf] }
  0xac   : > { %2049 = vmatpush.bf16.msra.mxu3 %v4162_v27  ;;  %2024 = vmatpush.bf16.msra.mxu1 %v3618_v34  ;;  %v4001_v17 = vld [vmem:[%s5267_s2 + $0x688] sm:$0xf]  ;;  %v3746_v22 = vor.u32 %v4596_v16, %v3745_v15  ;;  %v3587_v14 = vld [vmem:[%s5267_s2 + $0x368] sm:$0xf0] }
  0xad   : > { %v4660_v18 = vld [vmem:[%s5267_s2 + $0x6a4] sm:$0xf0]  ;;  %v4616_v15 = vld [vmem:[%s5267_s2 + $0x54c] sm:$0xf] }
  0xae   : > { %2037 = vmatpush.bf16.msra.mxu2 %v3874_v35  ;;  %2012 = vmatpush.bf16.msra.mxu0 %v3330_v45  ;;  %v3201_v23 = vld [vmem:[%s5267_s2 + $0x48] sm:$0xf]  ;;  %v4002_v27 = vor.u32 %v4660_v18, %v4001_v17  ;;  %v4504_v45 = vld [vmem:[%s5267_s2 + $0x1cc] sm:$0xf] }
  0xaf   : > { %v4460_v24 = vld [vmem:[%s5267_s2 + $0x64] sm:$0xf0]  ;;  %v3843_v16 = vld [vmem:[%s5267_s2 + $0x568] sm:$0xf0] }
  0xb0   : > { %2050 = vmatpush.bf16.msra.mxu3 %v4130_v39  ;;  %2025 = vmatpush.bf16.msra.mxu1 %v3586_v46  ;;  %v3457_v25 = vld [vmem:[%s5267_s2 + $0x248] sm:$0xf]  ;;  %v3202_v33 = vor.u32 %v4460_v24, %v3201_v23  ;;  %v3395_v46 = vld [vmem:[%s5267_s2 + $0x1e8] sm:$0xf0] }
  0xb1   : > { %v4524_v28 = vld [vmem:[%s5267_s2 + $0x264] sm:$0xf0]  ;;  %v4680_v17 = vld [vmem:[%s5267_s2 + $0x74c] sm:$0xf] }
  0xb2   : > { %2038 = vmatpush.bf16.msra.mxu2 %v3842_v47  ;;  %2013 = vmatpush.bf16.msra.mxu0 %v3298_v57  ;;  %v3713_v29 = vld [vmem:[%s5267_s2 + $0x448] sm:$0xf]  ;;  %v3458_v36 = vor.u32 %v4524_v28, %v3457_v25  ;;  %v4568_v47 = vld [vmem:[%s5267_s2 + $0x3cc] sm:$0xf]  ;;  %v3398_v57 = vor.u32 %v4504_v45, %v3395_v46 }
  0xb3   : > { %v4588_v30 = vld [vmem:[%s5267_s2 + $0x464] sm:$0xf0]  ;;  %v4099_v18 = vld [vmem:[%s5267_s2 + $0x768] sm:$0xf0] }
  0xb4   : > { %2051 = vmatpush.bf16.msra.mxu3 %v4098_v51  ;;  %2026 = vmatpush.bf16.msra.mxu1 %v3554_v58  ;;  %v3969_v31 = vld [vmem:[%s5267_s2 + $0x648] sm:$0xf]  ;;  %v3714_v37 = vor.u32 %v4588_v30, %v3713_v29  ;;  %v3907_v51 = vld [vmem:[%s5267_s2 + $0x5e8] sm:$0xf0]  ;;  %v3654_v58 = vor.u32 %v4568_v47, %v3651_v49 }
  0xb5   : > { %v4652_v32 = vld [vmem:[%s5267_s2 + $0x664] sm:$0xf0]  ;;  %v4480_v23 = vld [vmem:[%s5267_s2 + $0x10c] sm:$0xf] }
  0xb6   : > { %2039 = vmatpush.bf16.msra.mxu2 %v3810_v59  ;;  %2014 = vmatpush.bf16.msra.mxu0 %v3266_v5  ;;  %v3169_v34 = vld [vmem:[%s5267_s2 + $0x8] sm:$0xf]  ;;  %v3970_v41 = vor.u32 %v4652_v32, %v3969_v31  ;;  %v3910_v59 = vor.u32 %v4632_v50, %v3907_v51  ;;  %v3366_v5 = vor.u32 %v4496_v60, %v3363_v61  ;;  %v3299_v24 = vld [vmem:[%s5267_s2 + $0x128] sm:$0xf0] }
  0xb7   : > { %v4452_v35 = vld [vmem:[%s5267_s2 + $0x24] sm:$0xf0]  ;;  %v4544_v25 = vld [vmem:[%s5267_s2 + $0x30c] sm:$0xf] }
  0xb8   : > { %2052 = vmatpush.bf16.msra.mxu3 %v4066_v63  ;;  %2027 = vmatpush.bf16.msra.mxu1 %v3522_v6  ;;  %v3425_v38 = vld [vmem:[%s5267_s2 + $0x208] sm:$0xf]  ;;  %v3170_v48 = vor.u32 %v4452_v35, %v3169_v34  ;;  %v4166_v63 = vor.u32 %v4696_v54, %v4163_v55  ;;  %v3622_v6 = vor.u32 %v4560_v62, %v3619_v0  ;;  %v3555_v28 = vld [vmem:[%s5267_s2 + $0x328] sm:$0xf0] }
  0xb9   : > { %v4516_v39 = vld [vmem:[%s5267_s2 + $0x224] sm:$0xf0]  ;;  %v4608_v29 = vld [vmem:[%s5267_s2 + $0x50c] sm:$0xf]  ;;  %v3558_v34 = vor.u32 %v4544_v25, %v3555_v28  ;;  %v3913_v25 = vld [vmem:[%s5267_s2 + $0x5d0] sm:$0xf] }
  0xba   : > { %2040 = vmatpush.bf16.msra.mxu2 %v3778_v7  ;;  %2015 = vmatpush.bf16.msra.mxu0 %v3234_v20  ;;  %v3681_v40 = vld [vmem:[%s5267_s2 + $0x408] sm:$0xf]  ;;  %v3426_v52 = vor.u32 %v4516_v39, %v3425_v38  ;;  %v3878_v7 = vor.u32 %v4624_v1, %v3875_v2  ;;  %v3334_v20 = vor.u32 %v4488_v8, %v3331_v11  ;;  %v3811_v30 = vld [vmem:[%s5267_s2 + $0x528] sm:$0xf0] }
  0xbb   : > { %v4580_v42 = vld [vmem:[%s5267_s2 + $0x424] sm:$0xf0]  ;;  %v4672_v31 = vld [vmem:[%s5267_s2 + $0x70c] sm:$0xf]  ;;  %v3814_v35 = vor.u32 %v4608_v29, %v3811_v30  ;;  %v4169_v30 = vld [vmem:[%s5267_s2 + $0x7d0] sm:$0xf] }
  0xbc   : > { %2053 = vmatpush.bf16.msra.mxu3 %v4034_v13  ;;  %2028 = vmatpush.bf16.msra.mxu1 %v3490_v21  ;;  %v3937_v43 = vld [vmem:[%s5267_s2 + $0x608] sm:$0xf]  ;;  %v3682_v53 = vor.u32 %v4580_v42, %v3681_v40  ;;  %v4134_v13 = vor.u32 %v4688_v3, %v4131_v4  ;;  %v3590_v21 = vor.u32 %v4552_v12, %v3587_v14  ;;  %v4067_v32 = vld [vmem:[%s5267_s2 + $0x728] sm:$0xf0] }
  0xbd   : > { %v4644_v44 = vld [vmem:[%s5267_s2 + $0x624] sm:$0xf0]  ;;  %v4536_v38 = vld [vmem:[%s5267_s2 + $0x2cc] sm:$0xf]  ;;  %v4070_v39 = vor.u32 %v4672_v31, %v4067_v32  ;;  %v4701_v31 = vld [vmem:[%s5267_s2 + $0x7ec] sm:$0xf0] }
  0xbe   : > { %2041 = vmatpush.bf16.msra.mxu2 %v3746_v22  ;;  %2016 = vmatpush.bf16.msra.mxu0 %v3202_v33  ;;  %v3938_v56 = vor.u32 %v4644_v44, %v3937_v43  ;;  %v3846_v22 = vor.u32 %v4616_v15, %v3843_v16  ;;  %v3302_v33 = vor.u32 %v4480_v23, %v3299_v24  ;;  %v3523_v40 = vld [vmem:[%s5267_s2 + $0x2e8] sm:$0xf0]  ;;  %v4573_v24 = vld [vmem:[%s5267_s2 + $0x3ec] sm:$0xf0] }
  0xbf   : > { %v3779_v42 = vld [vmem:[%s5267_s2 + $0x4e8] sm:$0xf0]  ;;  %v3526_v46 = vor.u32 %v4536_v38, %v3523_v40  ;;  %v3625_v38 = vld [vmem:[%s5267_s2 + $0x390] sm:$0xf] }
  0xc0   : > { %2054 = vmatpush.bf16.msra.mxu3 %v4002_v27  ;;  %2029 = vmatpush.bf16.msra.mxu1 %v3458_v36  ;;  %v4102_v27 = vor.u32 %v4680_v17, %v4099_v18  ;;  %v4472_v36 = vld [vmem:[%s5267_s2 + $0xcc] sm:$0xf]  ;;  %v4565_v40 = vld [vmem:[%s5267_s2 + $0x3ac] sm:$0xf0] }
  0xc1   : > { %v4664_v43 = vld [vmem:[%s5267_s2 + $0x6cc] sm:$0xf] }
  0xc2   : > { %2042 = vmatpush.bf16.msra.mxu2 %v3714_v37  ;;  %2017 = vmatpush.bf16.msra.mxu0 %v3170_v48  ;;  %v3267_v37 = vld [vmem:[%s5267_s2 + $0xe8] sm:$0xf0] }
  0xc3   : > { %v4035_v44 = vld [vmem:[%s5267_s2 + $0x6e8] sm:$0xf0]  ;;  %v3270_v45 = vor.u32 %v4472_v36, %v3267_v37  ;;  %v3369_v36 = vld [vmem:[%s5267_s2 + $0x190] sm:$0xf] }
  0xc4   : > { %2055 = vmatpush.bf16.msra.mxu3 %v3970_v41  ;;  %2030 = vmatpush.bf16.msra.mxu1 %v3426_v52  ;;  %v4600_v41 = vld [vmem:[%s5267_s2 + $0x4cc] sm:$0xf]  ;;  %v4038_v51 = vor.u32 %v4664_v43, %v4035_v44  ;;  %v4501_v37 = vld [vmem:[%s5267_s2 + $0x1ac] sm:$0xf0] }
  0xc5   : > { %2018 = vmatmul.bf16.vlgmr.msra.gmra.mxu0 %v5387_v19  ;;  %v3782_v47 = vor.u32 %v4600_v41, %v3779_v42  ;;  %v4464_v48 = vld [vmem:[%s5267_s2 + $0x8c] sm:$0xf]  ;;  %v3881_v41 = vld [vmem:[%s5267_s2 + $0x590] sm:$0xf] }
  0xc6   : > { %2043 = vmatpush.bf16.msra.mxu2 %v3682_v53  ;;  %2062 = vmatpush.bf16.msrb.mxu0 %v3398_v57  ;;  %v3235_v49 = vld [vmem:[%s5267_s2 + $0xa8] sm:$0xf0]  ;;  %v4629_v42 = vld [vmem:[%s5267_s2 + $0x5ac] sm:$0xf0] }
  0xc7   : > { %2031 = vmatmul.bf16.vlgmr.msra.gmra.mxu1 %v5393_v26  ;;  %v4528_v50 = vld [vmem:[%s5267_s2 + $0x28c] sm:$0xf]  ;;  %v3238_v57 = vor.u32 %v4464_v48, %v3235_v49  ;;  %v4137_v43 = vld [vmem:[%s5267_s2 + $0x790] sm:$0xf] }
  0xc8   : > { %2056 = vmatpush.bf16.msra.mxu3 %v3938_v56  ;;  %2075 = vmatpush.bf16.msrb.mxu1 %v3654_v58  ;;  %v3491_v52 = vld [vmem:[%s5267_s2 + $0x2a8] sm:$0xf0]  ;;  %v4693_v44 = vld [vmem:[%s5267_s2 + $0x7ac] sm:$0xf0] }
  0xc9   : > { %2044 = vmatmul.bf16.vlgmr.msra.gmra.mxu2 %v5375_v9  ;;  %v4592_v53 = vld [vmem:[%s5267_s2 + $0x48c] sm:$0xf]  ;;  %v3494_v58 = vor.u32 %v4528_v50, %v3491_v52  ;;  %v3337_v48 = vld [vmem:[%s5267_s2 + $0x150] sm:$0xf] }
  0xca   : > { %2088 = vmatpush.bf16.msrb.mxu2 %v3910_v59  ;;  %2063 = vmatpush.bf16.msrb.mxu0 %v3366_v5  ;;  %v3747_v54 = vld [vmem:[%s5267_s2 + $0x4a8] sm:$0xf0]  ;;  %v4493_v49 = vld [vmem:[%s5267_s2 + $0x16c] sm:$0xf0] }
  0xcb   : > { %2057 = vmatmul.bf16.vlgmr.msra.gmra.mxu3 %v5377_v10  ;;  %v4656_v55 = vld [vmem:[%s5267_s2 + $0x68c] sm:$0xf]  ;;  %v3750_v59 = vor.u32 %v4592_v53, %v3747_v54  ;;  %v3593_v50 = vld [vmem:[%s5267_s2 + $0x350] sm:$0xf] }
  0xcc   : > { %2101 = vmatpush.bf16.msrb.mxu3 %v4166_v63  ;;  %2076 = vmatpush.bf16.msrb.mxu1 %v3622_v6  ;;  %v4003_v56 = vld [vmem:[%s5267_s2 + $0x6a8] sm:$0xf0]  ;;  %v4557_v52 = vld [vmem:[%s5267_s2 + $0x36c] sm:$0xf0] }
  0xcd   : > { %v4456_v60 = vld [vmem:[%s5267_s2 + $0x4c] sm:$0xf]  ;;  %v4006_v63 = vor.u32 %v4656_v55, %v4003_v56  ;;  %v3849_v53 = vld [vmem:[%s5267_s2 + $0x550] sm:$0xf] }
  0xce   : > { %2089 = vmatpush.bf16.msrb.mxu2 %v3878_v7  ;;  %2064 = vmatpush.bf16.msrb.mxu0 %v3334_v20  ;;  %v3203_v61 = vld [vmem:[%s5267_s2 + $0x68] sm:$0xf0]  ;;  %v3401_v20 = vld [vmem:[%s5267_s2 + $0x1d0] sm:$0xf] }
  0xcf   : > { %v4520_v62 = vld [vmem:[%s5267_s2 + $0x24c] sm:$0xf]  ;;  %v3206_v5 = vor.u32 %v4456_v60, %v3203_v61  ;;  %v4621_v54 = vld [vmem:[%s5267_s2 + $0x56c] sm:$0xf0] }
  0xd0   : > { %2102 = vmatpush.bf16.msrb.mxu3 %v4134_v13  ;;  %2077 = vmatpush.bf16.msrb.mxu1 %v3590_v21  ;;  %v3459_v0 = vld [vmem:[%s5267_s2 + $0x268] sm:$0xf0]  ;;  %v4509_v21 = vld [vmem:[%s5267_s2 + $0x1ec] sm:$0xf0] }
  0xd1   : > { %v4584_v1 = vld [vmem:[%s5267_s2 + $0x44c] sm:$0xf]  ;;  %v3462_v8 = vor.u32 %v4520_v62, %v3459_v0  ;;  %v4105_v55 = vld [vmem:[%s5267_s2 + $0x750] sm:$0xf] }
  0xd2   : > { %2090 = vmatpush.bf16.msrb.mxu2 %v3846_v22  ;;  %2065 = vmatpush.bf16.msrb.mxu0 %v3302_v33  ;;  %v3715_v2 = vld [vmem:[%s5267_s2 + $0x468] sm:$0xf0]  ;;  %v3657_v22 = vld [vmem:[%s5267_s2 + $0x3d0] sm:$0xf]  ;;  %v3402_v33 = vor.u32 %v4509_v21, %v3401_v20 }
  0xd3   : > { %v4648_v3 = vld [vmem:[%s5267_s2 + $0x64c] sm:$0xf]  ;;  %v3718_v11 = vor.u32 %v4584_v1, %v3715_v2  ;;  %v4685_v56 = vld [vmem:[%s5267_s2 + $0x76c] sm:$0xf0] }
  0xd4   : > { %2103 = vmatpush.bf16.msrb.mxu3 %v4102_v27  ;;  %2078 = vmatpush.bf16.msrb.mxu1 %v3558_v34  ;;  %v3971_v4 = vld [vmem:[%s5267_s2 + $0x668] sm:$0xf0]  ;;  %v4637_v27 = vld [vmem:[%s5267_s2 + $0x5ec] sm:$0xf0]  ;;  %v3658_v34 = vor.u32 %v4573_v24, %v3657_v22 }
  0xd5   : > { %v4448_v6 = vld [vmem:[%s5267_s2 + $0xc] sm:$0xf]  ;;  %v3974_v15 = vor.u32 %v4648_v3, %v3971_v4  ;;  %v3305_v60 = vld [vmem:[%s5267_s2 + $0x110] sm:$0xf] }
  0xd6   : > { %2091 = vmatpush.bf16.msrb.mxu2 %v3814_v35  ;;  %2066 = vmatpush.bf16.msrb.mxu0 %v3270_v45  ;;  %v3171_v7 = vld [vmem:[%s5267_s2 + $0x28] sm:$0xf0]  ;;  %v3914_v35 = vor.u32 %v4637_v27, %v3913_v25  ;;  %v3370_v45 = vor.u32 %v4501_v37, %v3369_v36  ;;  %v4485_v61 = vld [vmem:[%s5267_s2 + $0x12c] sm:$0xf0] }
  0xd7   : > { %v4512_v12 = vld [vmem:[%s5267_s2 + $0x20c] sm:$0xf]  ;;  %v3174_v23 = vor.u32 %v4448_v6, %v3171_v7  ;;  %v3561_v62 = vld [vmem:[%s5267_s2 + $0x310] sm:$0xf] }
  0xd8   : > { %2104 = vmatpush.bf16.msrb.mxu3 %v4070_v39  ;;  %2079 = vmatpush.bf16.msrb.mxu1 %v3526_v46  ;;  %v3427_v13 = vld [vmem:[%s5267_s2 + $0x228] sm:$0xf0]  ;;  %v4170_v39 = vor.u32 %v4701_v31, %v4169_v30  ;;  %v3626_v46 = vor.u32 %v4565_v40, %v3625_v38  ;;  %v4549_v0 = vld [vmem:[%s5267_s2 + $0x32c] sm:$0xf0] }
  0xd9   : > { %v4576_v14 = vld [vmem:[%s5267_s2 + $0x40c] sm:$0xf]  ;;  %v3430_v28 = vor.u32 %v4512_v12, %v3427_v13  ;;  %v3817_v1 = vld [vmem:[%s5267_s2 + $0x510] sm:$0xf]  ;;  %v3562_v6 = vor.u32 %v4549_v0, %v3561_v62  ;;  %v4633_v62 = vld [vmem:[%s5267_s2 + $0x5d4] sm:$0xf] }
  0xda   : > { %2092 = vmatpush.bf16.msrb.mxu2 %v3782_v47  ;;  %2067 = vmatpush.bf16.msrb.mxu0 %v3238_v57  ;;  %v3683_v16 = vld [vmem:[%s5267_s2 + $0x428] sm:$0xf0]  ;;  %v3882_v47 = vor.u32 %v4629_v42, %v3881_v41  ;;  %v3338_v57 = vor.u32 %v4493_v49, %v3337_v48  ;;  %v4613_v2 = vld [vmem:[%s5267_s2 + $0x52c] sm:$0xf0] }
  0xdb   : > { %v4640_v17 = vld [vmem:[%s5267_s2 + $0x60c] sm:$0xf]  ;;  %v3686_v29 = vor.u32 %v4576_v14, %v3683_v16  ;;  %v4073_v3 = vld [vmem:[%s5267_s2 + $0x710] sm:$0xf]  ;;  %v3818_v7 = vor.u32 %v4613_v2, %v3817_v1  ;;  %v4697_v2 = vld [vmem:[%s5267_s2 + $0x7d4] sm:$0xf] }
  0xdc   : > { %2105 = vmatpush.bf16.msrb.mxu3 %v4038_v51  ;;  %2080 = vmatpush.bf16.msrb.mxu1 %v3494_v58  ;;  %v3939_v18 = vld [vmem:[%s5267_s2 + $0x628] sm:$0xf0]  ;;  %v4138_v51 = vor.u32 %v4693_v44, %v4137_v43  ;;  %v3594_v58 = vor.u32 %v4557_v52, %v3593_v50  ;;  %v4677_v4 = vld [vmem:[%s5267_s2 + $0x72c] sm:$0xf0] }
  0xdd   : > { %v3942_v32 = vor.u32 %v4640_v17, %v3939_v18  ;;  %v3529_v12 = vld [vmem:[%s5267_s2 + $0x2d0] sm:$0xf]  ;;  %v4074_v13 = vor.u32 %v4677_v4, %v4073_v3  ;;  %v4171_v3 = vld [vmem:[%s5267_s2 + $0x7f0] sm:$0xf0] }
  0xde   : > { %2093 = vmatpush.bf16.msrb.mxu2 %v3750_v59  ;;  %2068 = vmatpush.bf16.msrb.mxu0 %v3206_v5  ;;  %v3850_v59 = vor.u32 %v4621_v54, %v3849_v53  ;;  %v3306_v5 = vor.u32 %v4485_v61, %v3305_v60  ;;  %v4541_v14 = vld [vmem:[%s5267_s2 + $0x2ec] sm:$0xf0]  ;;  %v3659_v61 = vld [vmem:[%s5267_s2 + $0x3f0] sm:$0xf0] }
  0xdf   : > { %v4605_v16 = vld [vmem:[%s5267_s2 + $0x4ec] sm:$0xf0]  ;;  %v3530_v21 = vor.u32 %v4541_v14, %v3529_v12  ;;  %v4561_v12 = vld [vmem:[%s5267_s2 + $0x394] sm:$0xf] }
  0xe0   : > { %2106 = vmatpush.bf16.msrb.mxu3 %v4006_v63  ;;  %2081 = vmatpush.bf16.msrb.mxu1 %v3462_v8  ;;  %v4106_v63 = vor.u32 %v4685_v56, %v4105_v55  ;;  %v3273_v8 = vld [vmem:[%s5267_s2 + $0xd0] sm:$0xf]  ;;  %v3627_v14 = vld [vmem:[%s5267_s2 + $0x3b0] sm:$0xf0] }
  0xe1   : > { %v4041_v17 = vld [vmem:[%s5267_s2 + $0x6d0] sm:$0xf] }
  0xe2   : > { %2094 = vmatpush.bf16.msrb.mxu2 %v3718_v11  ;;  %2069 = vmatpush.bf16.msrb.mxu0 %v3174_v23  ;;  %v4477_v11 = vld [vmem:[%s5267_s2 + $0xec] sm:$0xf0] }
  0xe3   : > { %v4669_v18 = vld [vmem:[%s5267_s2 + $0x6ec] sm:$0xf0]  ;;  %v3274_v20 = vor.u32 %v4477_v11, %v3273_v8  ;;  %v4497_v8 = vld [vmem:[%s5267_s2 + $0x194] sm:$0xf] }
  0xe4   : > { %2107 = vmatpush.bf16.msrb.mxu3 %v3974_v15  ;;  %2082 = vmatpush.bf16.msrb.mxu1 %v3430_v28  ;;  %v3785_v15 = vld [vmem:[%s5267_s2 + $0x4d0] sm:$0xf]  ;;  %v4042_v27 = vor.u32 %v4669_v18, %v4041_v17  ;;  %v3371_v11 = vld [vmem:[%s5267_s2 + $0x1b0] sm:$0xf0] }
  0xe5   : > { %2070 = vmatmul.bf16.vlgmr.msrb.gmra.mxu0 %v5387_v19  ;;  %v3786_v22 = vor.u32 %v4605_v16, %v3785_v15  ;;  %v3241_v23 = vld [vmem:[%s5267_s2 + $0x90] sm:$0xf]  ;;  %v4625_v15 = vld [vmem:[%s5267_s2 + $0x594] sm:$0xf] }
  0xe6   : > { %2095 = vmatpush.bf16.msrb.mxu2 %v3686_v29  ;;  %2114 = vmatpush.bf16.msra.mxu0 %v3402_v33  ;;  %v4469_v24 = vld [vmem:[%s5267_s2 + $0xac] sm:$0xf0]  ;;  %v3883_v16 = vld [vmem:[%s5267_s2 + $0x5b0] sm:$0xf0] }
  0xe7   : > { %2083 = vmatmul.bf16.vlgmr.msrb.gmra.mxu1 %v5393_v26  ;;  %v3497_v25 = vld [vmem:[%s5267_s2 + $0x290] sm:$0xf]  ;;  %v3242_v33 = vor.u32 %v4469_v24, %v3241_v23  ;;  %v4689_v17 = vld [vmem:[%s5267_s2 + $0x794] sm:$0xf] }
  0xe8   : > { %2108 = vmatpush.bf16.msrb.mxu3 %v3942_v32  ;;  %2127 = vmatpush.bf16.msra.mxu1 %v3658_v34  ;;  %v4533_v28 = vld [vmem:[%s5267_s2 + $0x2ac] sm:$0xf0]  ;;  %v4139_v18 = vld [vmem:[%s5267_s2 + $0x7b0] sm:$0xf0] }
  0xe9   : > { %2096 = vmatmul.bf16.vlgmr.msrb.gmra.mxu2 %v5375_v9  ;;  %v3753_v29 = vld [vmem:[%s5267_s2 + $0x490] sm:$0xf]  ;;  %v3498_v34 = vor.u32 %v4533_v28, %v3497_v25  ;;  %v4489_v23 = vld [vmem:[%s5267_s2 + $0x154] sm:$0xf] }
  0xea   : > { %2140 = vmatpush.bf16.msra.mxu2 %v3914_v35  ;;  %2115 = vmatpush.bf16.msra.mxu0 %v3370_v45  ;;  %v4597_v30 = vld [vmem:[%s5267_s2 + $0x4ac] sm:$0xf0]  ;;  %v3339_v24 = vld [vmem:[%s5267_s2 + $0x170] sm:$0xf0] }
  0xeb   : > { %2109 = vmatmul.bf16.vlgmr.msrb.gmra.mxu3 %v5377_v10  ;;  %v4009_v31 = vld [vmem:[%s5267_s2 + $0x690] sm:$0xf]  ;;  %v3754_v35 = vor.u32 %v4597_v30, %v3753_v29  ;;  %v4553_v25 = vld [vmem:[%s5267_s2 + $0x354] sm:$0xf] }
  0xec   : > { %2153 = vmatpush.bf16.msra.mxu3 %v4170_v39  ;;  %2128 = vmatpush.bf16.msra.mxu1 %v3626_v46  ;;  %v4661_v32 = vld [vmem:[%s5267_s2 + $0x6ac] sm:$0xf0]  ;;  %v3595_v28 = vld [vmem:[%s5267_s2 + $0x370] sm:$0xf0] }
  0xed   : > { %v3209_v36 = vld [vmem:[%s5267_s2 + $0x50] sm:$0xf]  ;;  %v4010_v39 = vor.u32 %v4661_v32, %v4009_v31  ;;  %v4617_v29 = vld [vmem:[%s5267_s2 + $0x554] sm:$0xf] }
  0xee   : > { %2141 = vmatpush.bf16.msra.mxu2 %v3882_v47  ;;  %2116 = vmatpush.bf16.msra.mxu0 %v3338_v57  ;;  %v4461_v37 = vld [vmem:[%s5267_s2 + $0x6c] sm:$0xf0]  ;;  %v4505_v57 = vld [vmem:[%s5267_s2 + $0x1d4] sm:$0xf] }
  0xef   : > { %v3465_v38 = vld [vmem:[%s5267_s2 + $0x250] sm:$0xf]  ;;  %v3210_v45 = vor.u32 %v4461_v37, %v3209_v36  ;;  %v3851_v30 = vld [vmem:[%s5267_s2 + $0x570] sm:$0xf0] }
  0xf0   : > { %2154 = vmatpush.bf16.msra.mxu3 %v4138_v51  ;;  %2129 = vmatpush.bf16.msra.mxu1 %v3594_v58  ;;  %v4525_v40 = vld [vmem:[%s5267_s2 + $0x26c] sm:$0xf0]  ;;  %v3403_v58 = vld [vmem:[%s5267_s2 + $0x1f0] sm:$0xf0] }
  0xf1   : > { %v3721_v41 = vld [vmem:[%s5267_s2 + $0x450] sm:$0xf]  ;;  %v3466_v48 = vor.u32 %v4525_v40, %v3465_v38  ;;  %v4681_v31 = vld [vmem:[%s5267_s2 + $0x754] sm:$0xf] }
  0xf2   : > { %2142 = vmatpush.bf16.msra.mxu2 %v3850_v59  ;;  %2117 = vmatpush.bf16.msra.mxu0 %v3306_v5  ;;  %v4589_v42 = vld [vmem:[%s5267_s2 + $0x46c] sm:$0xf0]  ;;  %v4569_v59 = vld [vmem:[%s5267_s2 + $0x3d4] sm:$0xf]  ;;  %v3406_v5 = vor.u32 %v4505_v57, %v3403_v58 }
  0xf3   : > { %v3977_v43 = vld [vmem:[%s5267_s2 + $0x650] sm:$0xf]  ;;  %v3722_v49 = vor.u32 %v4589_v42, %v3721_v41  ;;  %v4107_v32 = vld [vmem:[%s5267_s2 + $0x770] sm:$0xf0] }
  0xf4   : > { %2155 = vmatpush.bf16.msra.mxu3 %v4106_v63  ;;  %2130 = vmatpush.bf16.msra.mxu1 %v3562_v6  ;;  %v4653_v44 = vld [vmem:[%s5267_s2 + $0x66c] sm:$0xf0]  ;;  %v3915_v63 = vld [vmem:[%s5267_s2 + $0x5f0] sm:$0xf0]  ;;  %v3662_v6 = vor.u32 %v4569_v59, %v3659_v61 }
  0xf5   : > { %v3177_v46 = vld [vmem:[%s5267_s2 + $0x10] sm:$0xf]  ;;  %v3978_v53 = vor.u32 %v4653_v44, %v3977_v43  ;;  %v4481_v36 = vld [vmem:[%s5267_s2 + $0x114] sm:$0xf] }
  0xf6   : > { %2143 = vmatpush.bf16.msra.mxu2 %v3818_v7  ;;  %2118 = vmatpush.bf16.msra.mxu0 %v3274_v20  ;;  %v4453_v47 = vld [vmem:[%s5267_s2 + $0x2c] sm:$0xf0]  ;;  %v3918_v7 = vor.u32 %v4633_v62, %v3915_v63  ;;  %v3374_v20 = vor.u32 %v4497_v8, %v3371_v11  ;;  %v3307_v37 = vld [vmem:[%s5267_s2 + $0x130] sm:$0xf0] }
  0xf7   : > { %v3433_v50 = vld [vmem:[%s5267_s2 + $0x210] sm:$0xf]  ;;  %v3178_v60 = vor.u32 %v4453_v47, %v3177_v46  ;;  %v4545_v38 = vld [vmem:[%s5267_s2 + $0x314] sm:$0xf] }
  0xf8   : > { %2156 = vmatpush.bf16.msra.mxu3 %v4074_v13  ;;  %2131 = vmatpush.bf16.msra.mxu1 %v3530_v21  ;;  %v4517_v51 = vld [vmem:[%s5267_s2 + $0x22c] sm:$0xf0]  ;;  %v4174_v13 = vor.u32 %v4697_v2, %v4171_v3  ;;  %v3630_v21 = vor.u32 %v4561_v12, %v3627_v14  ;;  %v3563_v40 = vld [vmem:[%s5267_s2 + $0x330] sm:$0xf0] }
  0xf9   : > { %v3689_v52 = vld [vmem:[%s5267_s2 + $0x410] sm:$0xf]  ;;  %v3434_v0 = vor.u32 %v4517_v51, %v3433_v50  ;;  %v4609_v41 = vld [vmem:[%s5267_s2 + $0x514] sm:$0xf]  ;;  %v3566_v46 = vor.u32 %v4545_v38, %v3563_v40 }
  0xfa   : > { %2144 = vmatpush.bf16.msra.mxu2 %v3786_v22  ;;  %2119 = vmatpush.bf16.msra.mxu0 %v3242_v33  ;;  %v4581_v54 = vld [vmem:[%s5267_s2 + $0x42c] sm:$0xf0]  ;;  %v3886_v22 = vor.u32 %v4625_v15, %v3883_v16  ;;  %v3342_v33 = vor.u32 %v4489_v23, %v3339_v24  ;;  %v3819_v42 = vld [vmem:[%s5267_s2 + $0x530] sm:$0xf0] }
  0xfb   : > { %v3945_v55 = vld [vmem:[%s5267_s2 + $0x610] sm:$0xf]  ;;  %v3690_v1 = vor.u32 %v4581_v54, %v3689_v52  ;;  %v4673_v43 = vld [vmem:[%s5267_s2 + $0x714] sm:$0xf]  ;;  %v3822_v47 = vor.u32 %v4609_v41, %v3819_v42  ;;  %v3409_v41 = vld [vmem:[%s5267_s2 + $0x1d8] sm:$0xf] }
  0xfc   : > { %2157 = vmatpush.bf16.msra.mxu3 %v4042_v27  ;;  %2132 = vmatpush.bf16.msra.mxu1 %v3498_v34  ;;  %v4645_v56 = vld [vmem:[%s5267_s2 + $0x62c] sm:$0xf0]  ;;  %v4142_v27 = vor.u32 %v4689_v17, %v4139_v18  ;;  %v3598_v34 = vor.u32 %v4553_v25, %v3595_v28  ;;  %v4075_v44 = vld [vmem:[%s5267_s2 + $0x730] sm:$0xf0]  ;;  %v4510_v42 = vld [vmem:[%s5267_s2 + $0x1f4] sm:$0xf0] }
  0xfd   : > { %v3946_v4 = vor.u32 %v4645_v56, %v3945_v55  ;;  %v4537_v50 = vld [vmem:[%s5267_s2 + $0x2d4] sm:$0xf]  ;;  %v4078_v51 = vor.u32 %v4673_v43, %v4075_v44  ;;  %v3665_v43 = vld [vmem:[%s5267_s2 + $0x3d8] sm:$0xf] }
  0xfe   : > { %2145 = vmatpush.bf16.msra.mxu2 %v3754_v35  ;;  %2120 = vmatpush.bf16.msra.mxu0 %v3210_v45  ;;  %v3854_v35 = vor.u32 %v4617_v29, %v3851_v30  ;;  %v3310_v45 = vor.u32 %v4481_v36, %v3307_v37  ;;  %v3531_v52 = vld [vmem:[%s5267_s2 + $0x2f0] sm:$0xf0] }
  0xff   : > { %v3787_v54 = vld [vmem:[%s5267_s2 + $0x4f0] sm:$0xf0]  ;;  %v3534_v58 = vor.u32 %v4537_v50, %v3531_v52 }
 0x100   : > { %2158 = vmatpush.bf16.msra.mxu3 %v4010_v39  ;;  %2133 = vmatpush.bf16.msra.mxu1 %v3466_v48  ;;  %v4110_v39 = vor.u32 %v4681_v31, %v4107_v32  ;;  %v4473_v48 = vld [vmem:[%s5267_s2 + $0xd4] sm:$0xf] }
 0x101   : > { %v4665_v55 = vld [vmem:[%s5267_s2 + $0x6d4] sm:$0xf] }
 0x102   : > { %2146 = vmatpush.bf16.msra.mxu2 %v3722_v49  ;;  %2121 = vmatpush.bf16.msra.mxu0 %v3178_v60  ;;  %v3275_v49 = vld [vmem:[%s5267_s2 + $0xf0] sm:$0xf0] }
 0x103   : > { %v4043_v56 = vld [vmem:[%s5267_s2 + $0x6f0] sm:$0xf0]  ;;  %v3278_v57 = vor.u32 %v4473_v48, %v3275_v49  ;;  %v3921_v48 = vld [vmem:[%s5267_s2 + $0x5d8] sm:$0xf] }
 0x104   : > { %2159 = vmatpush.bf16.msra.mxu3 %v3978_v53  ;;  %2134 = vmatpush.bf16.msra.mxu1 %v3434_v0  ;;  %v4601_v53 = vld [vmem:[%s5267_s2 + $0x4d4] sm:$0xf]  ;;  %v4046_v63 = vor.u32 %v4665_v55, %v4043_v56  ;;  %v4638_v49 = vld [vmem:[%s5267_s2 + $0x5f4] sm:$0xf0]  ;;  %v3410_v56 = vor.u32 %v4510_v42, %v3409_v41 }
 0x105   : > { %2122 = vmatmul.bf16.vlgmr.msra.gmra.mxu0 %v5387_v19  ;;  %v3790_v59 = vor.u32 %v4601_v53, %v3787_v54  ;;  %v4465_v60 = vld [vmem:[%s5267_s2 + $0x94] sm:$0xf]  ;;  %v4177_v53 = vld [vmem:[%s5267_s2 + $0x7d8] sm:$0xf] }
 0x106   : > { %2147 = vmatpush.bf16.msra.mxu2 %v3690_v1  ;;  %2166 = vmatpush.bf16.msrb.mxu0 %v3406_v5  ;;  %v3243_v61 = vld [vmem:[%s5267_s2 + $0xb0] sm:$0xf0]  ;;  %v1915_v5 = vpop.f32.mrf.mxu0  ;;  %v4702_v54 = vld [vmem:[%s5267_s2 + $0x7f4] sm:$0xf0] }
 0x107   : > { %2135 = vmatmul.bf16.vlgmr.msra.gmra.mxu1 %v5393_v26  ;;  %v4529_v62 = vld [vmem:[%s5267_s2 + $0x294] sm:$0xf] }
 0x108   : > { %2160 = vmatpush.bf16.msra.mxu3 %v3946_v4  ;;  %2179 = vmatpush.bf16.msrb.mxu1 %v3662_v6  ;;  %v3499_v0 = vld [vmem:[%s5267_s2 + $0x2b0] sm:$0xf0]  ;;  %v3246_v6 = vor.u32 %v4465_v60, %v3243_v61  ;;  %v3922_v60 = vor.u32 %v4638_v49, %v3921_v48  ;;  %v3377_v61 = vld [vmem:[%s5267_s2 + $0x198] sm:$0xf] }
 0x109   : > { %2148 = vmatmul.bf16.vlgmr.msra.gmra.mxu2 %v5375_v9  ;;  %v4593_v1 = vld [vmem:[%s5267_s2 + $0x494] sm:$0xf]  ;;  %v3502_v8 = vor.u32 %v4529_v62, %v3499_v0  ;;  %v4502_v62 = vld [vmem:[%s5267_s2 + $0x1b4] sm:$0xf0]  ;;  %v4178_v0 = vor.u32 %v4702_v54, %v4177_v53 }
 0x10a   : > { %2192 = vmatpush.bf16.msrb.mxu2 %v3918_v7  ;;  %2167 = vmatpush.bf16.msrb.mxu0 %v3374_v20  ;;  %v3755_v2 = vld [vmem:[%s5267_s2 + $0x4b0] sm:$0xf0]  ;;  %v1928_v7 = vpop.f32.mrf.mxu1  ;;  %v4670_v48 = vld [vmem:[%s5267_s2 + $0x6f4] sm:$0xf0] }
 0x10b   : > { %2161 = vmatmul.bf16.vlgmr.msra.gmra.mxu3 %v5377_v10  ;;  %v4657_v3 = vld [vmem:[%s5267_s2 + $0x694] sm:$0xf]  ;;  %v3758_v11 = vor.u32 %v4593_v1, %v3755_v2  ;;  %v1929_v15 = vadd.f32 %v1928_v7, %v1915_v5  ;;  %v4566_v1 = vld [vmem:[%s5267_s2 + $0x3b4] sm:$0xf0] }
 0x10c   : > { %2205 = vmatpush.bf16.msrb.mxu3 %v4174_v13  ;;  %2180 = vmatpush.bf16.msrb.mxu1 %v3630_v21  ;;  %v4011_v4 = vld [vmem:[%s5267_s2 + $0x6b0] sm:$0xf0]  ;;  %v1941_v21 = vpop.f32.mrf.mxu2  ;;  %v3889_v2 = vld [vmem:[%s5267_s2 + $0x598] sm:$0xf] }
 0x10d   : > { %v4457_v12 = vld [vmem:[%s5267_s2 + $0x54] sm:$0xf]  ;;  %v4014_v16 = vor.u32 %v4657_v3, %v4011_v4  ;;  %v1942_v25 = vadd.f32 %v1941_v21, %v1929_v15  ;;  %v4630_v3 = vld [vmem:[%s5267_s2 + $0x5b4] sm:$0xf0] }
 0x10e   : > { %2193 = vmatpush.bf16.msrb.mxu2 %v3886_v22  ;;  %2168 = vmatpush.bf16.msrb.mxu0 %v3342_v33  ;;  %v3211_v13 = vld [vmem:[%s5267_s2 + $0x70] sm:$0xf0]  ;;  %v1954_v22 = vpop.f32.mrf.mxu3  ;;  %v4145_v4 = vld [vmem:[%s5267_s2 + $0x798] sm:$0xf] }
 0x10f   : > { %v4521_v14 = vld [vmem:[%s5267_s2 + $0x254] sm:$0xf]  ;;  %v1955_v36 = vadd.f32 %v1954_v22, %v1942_v25  ;;  %v4694_v5 = vld [vmem:[%s5267_s2 + $0x7b4] sm:$0xf0] }
 0x110   : > { %2206 = vmatpush.bf16.msrb.mxu3 %v4142_v27  ;;  %2181 = vmatpush.bf16.msrb.mxu1 %v3598_v34  ;;  %v3467_v17 = vld [vmem:[%s5267_s2 + $0x270] sm:$0xf0]  ;;  %v3214_v27 = vor.u32 %v4457_v12, %v3211_v13  ;;  %v4494_v12 = vld [vmem:[%s5267_s2 + $0x174] sm:$0xf0] }
 0x111   : > { %v4585_v18 = vld [vmem:[%s5267_s2 + $0x454] sm:$0xf]  ;;  %v3470_v31 = vor.u32 %v4521_v14, %v3467_v17  ;;  %v3601_v13 = vld [vmem:[%s5267_s2 + $0x358] sm:$0xf]  ;;  %v4146_v14 = vor.u32 %v4694_v5, %v4145_v4 }
 0x112   : > { %2194 = vmatpush.bf16.msrb.mxu2 %v3854_v35  ;;  %2169 = vmatpush.bf16.msrb.mxu0 %v3310_v45  ;;  %v3723_v20 = vld [vmem:[%s5267_s2 + $0x470] sm:$0xf0]  ;;  %v1917_v45 = vpop.f32.mrf.mxu0  ;;  %v1930_v50 = vpop.f32.mrf.mxu1  ;;  %v4558_v15 = vld [vmem:[%s5267_s2 + $0x374] sm:$0xf0] }
 0x113   : > { %v4649_v23 = vld [vmem:[%s5267_s2 + $0x654] sm:$0xf]  ;;  %v3726_v32 = vor.u32 %v4585_v18, %v3723_v20  ;;  %v4622_v17 = vld [vmem:[%s5267_s2 + $0x574] sm:$0xf0]  ;;  %v3602_v22 = vor.u32 %v4558_v15, %v3601_v13 }
 0x114   : > { %2207 = vmatpush.bf16.msrb.mxu3 %v4110_v39  ;;  %2182 = vmatpush.bf16.msrb.mxu1 %v3566_v46  ;;  %v3979_v24 = vld [vmem:[%s5267_s2 + $0x670] sm:$0xf0]  ;;  %v4113_v18 = vld [vmem:[%s5267_s2 + $0x758] sm:$0xf] }
 0x115   : > { %v4449_v28 = vld [vmem:[%s5267_s2 + $0x14] sm:$0xf]  ;;  %v3982_v37 = vor.u32 %v4649_v23, %v3979_v24  ;;  %v4686_v20 = vld [vmem:[%s5267_s2 + $0x774] sm:$0xf0] }
 0x116   : > { %2195 = vmatpush.bf16.msrb.mxu2 %v3822_v47  ;;  %2170 = vmatpush.bf16.msrb.mxu0 %v3278_v57  ;;  %v3179_v29 = vld [vmem:[%s5267_s2 + $0x30] sm:$0xf0]  ;;  %v4574_v47 = vld [vmem:[%s5267_s2 + $0x3f4] sm:$0xf0]  ;;  %v1943_v57 = vpop.f32.mrf.mxu2 }
 0x117   : > { %v354_v30 = vld [vmem:[#allocation2 + $0x30] sm:$0xff]  ;;  %v3182_v46 = vor.u32 %v4449_v28, %v3179_v29  ;;  %v3313_v24 = vld [vmem:[%s5267_s2 + $0x118] sm:$0xf]  ;;  %v4114_v28 = vor.u32 %v4686_v20, %v4113_v18 }
 0x118   : > { %2208 = vmatpush.bf16.msrb.mxu3 %v4078_v51  ;;  %2183 = vmatpush.bf16.msrb.mxu1 %v3534_v58  ;;  %v4513_v33 = vld [vmem:[%s5267_s2 + $0x214] sm:$0xf]  ;;  %v2322_v44 = vadd.f32 %v1955_v36, %v354_v30  ;;  %v1956_v58 = vpop.f32.mrf.mxu3  ;;  %v4486_v25 = vld [vmem:[%s5267_s2 + $0x134] sm:$0xf0] }
 0x119   : > { %v3435_v34 = vld [vmem:[%s5267_s2 + $0x230] sm:$0xf0]  ;;  %v4550_v29 = vld [vmem:[%s5267_s2 + $0x334] sm:$0xf0] }
 0x11a   : > { %2196 = vmatpush.bf16.msrb.mxu2 %v3790_v59  ;;  %2171 = vmatpush.bf16.msrb.mxu0 %v3246_v6  ;;  %v4577_v35 = vld [vmem:[%s5267_s2 + $0x414] sm:$0xf]  ;;  %v3438_v51 = vor.u32 %v4513_v33, %v3435_v34  ;;  %2330 = vst [vmem:[#allocation2 + $0x30] sm:$0xff] %v2322_v44  ;;  %v3666_v59 = vor.u32 %v4574_v47, %v3665_v43  ;;  %v3825_v30 = vld [vmem:[%s5267_s2 + $0x518] sm:$0xf] }
 0x11b   : > { %v3691_v38 = vld [vmem:[%s5267_s2 + $0x430] sm:$0xf0]  ;;  %v3378_v6 = vor.u32 %v4502_v62, %v3377_v61  ;;  %v4678_v33 = vld [vmem:[%s5267_s2 + $0x734] sm:$0xf0]  ;;  %v3314_v34 = vor.u32 %v4486_v25, %v3313_v24 }
 0x11c   : > { %2209 = vmatpush.bf16.msrb.mxu3 %v4046_v63  ;;  %2184 = vmatpush.bf16.msrb.mxu1 %v3502_v8  ;;  %v4641_v39 = vld [vmem:[%s5267_s2 + $0x614] sm:$0xf]  ;;  %v3694_v52 = vor.u32 %v4577_v35, %v3691_v38  ;;  %v3633_v63 = vld [vmem:[%s5267_s2 + $0x398] sm:$0xf]  ;;  %v3890_v8 = vor.u32 %v4630_v3, %v3889_v2 }
 0x11d   : > { %v3947_v40 = vld [vmem:[%s5267_s2 + $0x630] sm:$0xf0]  ;;  %v3634_v7 = vor.u32 %v4566_v1, %v3633_v63  ;;  %v3281_v38 = vld [vmem:[%s5267_s2 + $0xd8] sm:$0xf] }
 0x11e   : > { %2197 = vmatpush.bf16.msrb.mxu2 %v3758_v11  ;;  %2172 = vmatpush.bf16.msrb.mxu0 %v3214_v27  ;;  %v3950_v55 = vor.u32 %v4641_v39, %v3947_v40  ;;  %v3345_v11 = vld [vmem:[%s5267_s2 + $0x158] sm:$0xf] }
 0x11f   : > { %v3346_v21 = vor.u32 %v4494_v12, %v3345_v11  ;;  %v3569_v27 = vld [vmem:[%s5267_s2 + $0x318] sm:$0xf] }
 0x120   : > { %2210 = vmatpush.bf16.msrb.mxu3 %v4014_v16  ;;  %2185 = vmatpush.bf16.msrb.mxu1 %v3470_v31  ;;  %v3857_v16 = vld [vmem:[%s5267_s2 + $0x558] sm:$0xf]  ;;  %v3570_v36 = vor.u32 %v4550_v29, %v3569_v27 }
 0x121   : > { %v3858_v23 = vor.u32 %v4622_v17, %v3857_v16  ;;  %v4614_v31 = vld [vmem:[%s5267_s2 + $0x534] sm:$0xf0] }
 0x122   : > { %2198 = vmatpush.bf16.msrb.mxu2 %v3726_v32  ;;  %2173 = vmatpush.bf16.msrb.mxu0 %v3182_v46  ;;  %v4081_v32 = vld [vmem:[%s5267_s2 + $0x718] sm:$0xf]  ;;  %v1967_v35 = vpop.f32.mrf.mxu0 }
 0x123   : > { %v4478_v39 = vld [vmem:[%s5267_s2 + $0xf4] sm:$0xf0]  ;;  %v4082_v42 = vor.u32 %v4678_v33, %v4081_v32 }
 0x124   : > { %2211 = vmatpush.bf16.msrb.mxu3 %v3982_v37  ;;  %2186 = vmatpush.bf16.msrb.mxu1 %v3438_v51  ;;  %v3826_v37 = vor.u32 %v4614_v31, %v3825_v30  ;;  %v3537_v40 = vld [vmem:[%s5267_s2 + $0x2d8] sm:$0xf]  ;;  %v1980_v41 = vpop.f32.mrf.mxu1  ;;  %v3282_v49 = vor.u32 %v4478_v39, %v3281_v38  ;;  %v3667_v39 = vld [vmem:[%s5267_s2 + $0x3f8] sm:$0xf0] }
 0x125   : > { %2174 = vmatmul.bf16.vlgmr.msrb.gmra.mxu0 %v5387_v19  ;;  %v4542_v43 = vld [vmem:[%s5267_s2 + $0x2f4] sm:$0xf0]  ;;  %v1981_v46 = vadd.f32 %v1980_v41, %v1967_v35  ;;  %v4506_v35 = vld [vmem:[%s5267_s2 + $0x1dc] sm:$0xf] }
 0x126   : > { %2199 = vmatpush.bf16.msrb.mxu2 %v3694_v52  ;;  %2218 = vmatpush.bf16.msra.mxu0 %v3410_v56  ;;  %v3793_v44 = vld [vmem:[%s5267_s2 + $0x4d8] sm:$0xf]  ;;  %v3538_v50 = vor.u32 %v4542_v43, %v3537_v40  ;;  %v4634_v40 = vld [vmem:[%s5267_s2 + $0x5dc] sm:$0xf] }
 0x127   : > { %2187 = vmatmul.bf16.vlgmr.msrb.gmra.mxu1 %v5393_v26  ;;  %v4606_v45 = vld [vmem:[%s5267_s2 + $0x4f4] sm:$0xf0]  ;;  %v3923_v41 = vld [vmem:[%s5267_s2 + $0x5f8] sm:$0xf0] }
 0x128   : > { %2212 = vmatpush.bf16.msrb.mxu3 %v3950_v55  ;;  %2231 = vmatpush.bf16.msra.mxu1 %v3666_v59  ;;  %v4049_v47 = vld [vmem:[%s5267_s2 + $0x6d8] sm:$0xf]  ;;  %v3794_v51 = vor.u32 %v4606_v45, %v3793_v44  ;;  %v4698_v44 = vld [vmem:[%s5267_s2 + $0x7dc] sm:$0xf] }
 0x129   : > { %2200 = vmatmul.bf16.vlgmr.msrb.gmra.mxu2 %v5375_v9  ;;  %v3249_v52 = vld [vmem:[%s5267_s2 + $0x98] sm:$0xf]  ;;  %v4050_v56 = vor.u32 %v4670_v48, %v4049_v47  ;;  %v4179_v45 = vld [vmem:[%s5267_s2 + $0x7f8] sm:$0xf0] }
 0x12a   : > { %2244 = vmatpush.bf16.msra.mxu2 %v3922_v60  ;;  %2219 = vmatpush.bf16.msra.mxu0 %v3378_v6  ;;  %v4470_v53 = vld [vmem:[%s5267_s2 + $0xb4] sm:$0xf0]  ;;  %v1969_v3 = vpop.f32.mrf.mxu0 }
 0x12b   : > { %2213 = vmatmul.bf16.vlgmr.msrb.gmra.mxu3 %v5377_v10  ;;  %v3505_v54 = vld [vmem:[%s5267_s2 + $0x298] sm:$0xf]  ;;  %v3250_v1 = vor.u32 %v4470_v53, %v3249_v52  ;;  %v4562_v52 = vld [vmem:[%s5267_s2 + $0x39c] sm:$0xf]  ;;  %v4182_v53 = vor.u32 %v4698_v44, %v4179_v45 }
 0x12c   : > { %2257 = vmatpush.bf16.msra.mxu3 %v4178_v0  ;;  %2232 = vmatpush.bf16.msra.mxu1 %v3634_v7  ;;  %v1993_v55 = vpop.f32.mrf.mxu2  ;;  %v4534_v57 = vld [vmem:[%s5267_s2 + $0x2b4] sm:$0xf0]  ;;  %v355_v0 = vld [vmem:[#allocation2] sm:$0xff]  ;;  %v1982_v11 = vpop.f32.mrf.mxu1  ;;  %v4618_v3 = vld [vmem:[%s5267_s2 + $0x55c] sm:$0xf] }
 0x12d   : > { %v3761_v58 = vld [vmem:[%s5267_s2 + $0x498] sm:$0xf]  ;;  %v1994_v60 = vadd.f32 %v1993_v55, %v1981_v46  ;;  %v3506_v4 = vor.u32 %v4534_v57, %v3505_v54  ;;  %v3635_v54 = vld [vmem:[%s5267_s2 + $0x3b8] sm:$0xf0] }
 0x12e   : > { %2245 = vmatpush.bf16.msra.mxu2 %v3890_v8  ;;  %2220 = vmatpush.bf16.msra.mxu0 %v3346_v21  ;;  %v4598_v59 = vld [vmem:[%s5267_s2 + $0x4b4] sm:$0xf0]  ;;  %v2006_v61 = vpop.f32.mrf.mxu3  ;;  %v4626_v55 = vld [vmem:[%s5267_s2 + $0x59c] sm:$0xf] }
 0x12f   : > { %v4017_v62 = vld [vmem:[%s5267_s2 + $0x698] sm:$0xf]  ;;  %v2007_v2 = vadd.f32 %v2006_v61, %v1994_v60  ;;  %v3762_v5 = vor.u32 %v4598_v59, %v3761_v58  ;;  %v4690_v57 = vld [vmem:[%s5267_s2 + $0x79c] sm:$0xf]  ;;  %v3638_v60 = vor.u32 %v4562_v52, %v3635_v54 }
 0x130   : > { %2258 = vmatpush.bf16.msra.mxu3 %v4146_v14  ;;  %2233 = vmatpush.bf16.msra.mxu1 %v3602_v22  ;;  %v4662_v63 = vld [vmem:[%s5267_s2 + $0x6b4] sm:$0xf0]  ;;  %v4147_v58 = vld [vmem:[%s5267_s2 + $0x7b8] sm:$0xf0] }
 0x131   : > { %v3217_v6 = vld [vmem:[%s5267_s2 + $0x58] sm:$0xf]  ;;  %v4018_v12 = vor.u32 %v4662_v63, %v4017_v62  ;;  %v2323_v16 = vadd.f32 %v2007_v2, %v355_v0  ;;  %v4490_v62 = vld [vmem:[%s5267_s2 + $0x15c] sm:$0xf] }
 0x132   : > { %2246 = vmatpush.bf16.msra.mxu2 %v3858_v23  ;;  %2221 = vmatpush.bf16.msra.mxu0 %v3314_v34  ;;  %v4462_v7 = vld [vmem:[%s5267_s2 + $0x74] sm:$0xf0]  ;;  %v3347_v63 = vld [vmem:[%s5267_s2 + $0x178] sm:$0xf0] }
 0x133   : > { %v3473_v8 = vld [vmem:[%s5267_s2 + $0x258] sm:$0xf]  ;;  %v3218_v20 = vor.u32 %v4462_v7, %v3217_v6  ;;  %2331 = vst [vmem:[#allocation2] sm:$0xff] %v2323_v16  ;;  %v4554_v0 = vld [vmem:[%s5267_s2 + $0x35c] sm:$0xf]  ;;  %v3350_v7 = vor.u32 %v4490_v62, %v3347_v63 }
 0x134   : > { %2259 = vmatpush.bf16.msra.mxu3 %v4114_v28  ;;  %2234 = vmatpush.bf16.msra.mxu1 %v3570_v36  ;;  %v4526_v13 = vld [vmem:[%s5267_s2 + $0x274] sm:$0xf0]  ;;  %v1995_v29 = vpop.f32.mrf.mxu2  ;;  %v3411_v36 = vld [vmem:[%s5267_s2 + $0x1f8] sm:$0xf0] }
 0x135   : > { %v3729_v14 = vld [vmem:[%s5267_s2 + $0x458] sm:$0xf]  ;;  %v3474_v23 = vor.u32 %v4526_v13, %v3473_v8  ;;  %v3414_v47 = vor.u32 %v4506_v35, %v3411_v36  ;;  %v3603_v2 = vld [vmem:[%s5267_s2 + $0x378] sm:$0xf0] }
 0x136   : > { %2247 = vmatpush.bf16.msra.mxu2 %v3826_v37  ;;  %2222 = vmatpush.bf16.msra.mxu0 %v3282_v49  ;;  %v4590_v15 = vld [vmem:[%s5267_s2 + $0x474] sm:$0xf0]  ;;  %v2008_v34 = vpop.f32.mrf.mxu3  ;;  %v4570_v37 = vld [vmem:[%s5267_s2 + $0x3dc] sm:$0xf]  ;;  %v3926_v49 = vor.u32 %v4634_v40, %v3923_v41  ;;  %v3606_v8 = vor.u32 %v4554_v0, %v3603_v2 }
 0x137   : > { %v3985_v17 = vld [vmem:[%s5267_s2 + $0x658] sm:$0xf]  ;;  %v3730_v24 = vor.u32 %v4590_v15, %v3729_v14  ;;  %v3670_v48 = vor.u32 %v4570_v37, %v3667_v39  ;;  %v4115_v6 = vld [vmem:[%s5267_s2 + $0x778] sm:$0xf0] }
 0x138   : > { %2260 = vmatpush.bf16.msra.mxu3 %v4082_v42  ;;  %2235 = vmatpush.bf16.msra.mxu1 %v3538_v50  ;;  %v4654_v18 = vld [vmem:[%s5267_s2 + $0x674] sm:$0xf0]  ;;  %v4498_v50 = vld [vmem:[%s5267_s2 + $0x19c] sm:$0xf] }
 0x139   : > { %v3185_v21 = vld [vmem:[%s5267_s2 + $0x18] sm:$0xf]  ;;  %v3986_v30 = vor.u32 %v4654_v18, %v3985_v17  ;;  %v3315_v13 = vld [vmem:[%s5267_s2 + $0x138] sm:$0xf0] }
 0x13a   : > { %2248 = vmatpush.bf16.msra.mxu2 %v3794_v51  ;;  %2223 = vmatpush.bf16.msra.mxu0 %v3250_v1  ;;  %v4454_v22 = vld [vmem:[%s5267_s2 + $0x34] sm:$0xf0]  ;;  %v3379_v51 = vld [vmem:[%s5267_s2 + $0x1b8] sm:$0xf0]  ;;  %v4150_v1 = vor.u32 %v4690_v57, %v4147_v58 }
 0x13b   : > { %v3441_v25 = vld [vmem:[%s5267_s2 + $0x218] sm:$0xf]  ;;  %v3186_v38 = vor.u32 %v4454_v22, %v3185_v21  ;;  %v3382_v59 = vor.u32 %v4498_v50, %v3379_v51  ;;  %v4546_v14 = vld [vmem:[%s5267_s2 + $0x31c] sm:$0xf] }
 0x13c   : > { %2261 = vmatpush.bf16.msra.mxu3 %v4050_v56  ;;  %2236 = vmatpush.bf16.msra.mxu1 %v3506_v4  ;;  %v4518_v27 = vld [vmem:[%s5267_s2 + $0x234] sm:$0xf0]  ;;  %v3891_v56 = vld [vmem:[%s5267_s2 + $0x5b8] sm:$0xf0] }
 0x13d   : > { %v3697_v28 = vld [vmem:[%s5267_s2 + $0x418] sm:$0xf]  ;;  %v3442_v42 = vor.u32 %v4518_v27, %v3441_v25  ;;  %v3894_v61 = vor.u32 %v4626_v55, %v3891_v56  ;;  %v3859_v4 = vld [vmem:[%s5267_s2 + $0x578] sm:$0xf0] }
 0x13e   : > { %2249 = vmatpush.bf16.msra.mxu2 %v3762_v5  ;;  %v4582_v31 = vld [vmem:[%s5267_s2 + $0x434] sm:$0xf0]  ;;  %2224 = vmatpush.bf16.msra.mxu0 %v3218_v20  ;;  %v4682_v5 = vld [vmem:[%s5267_s2 + $0x75c] sm:$0xf]  ;;  %v3862_v11 = vor.u32 %v4618_v3, %v3859_v4 }
 0x13f   : > { %v3953_v32 = vld [vmem:[%s5267_s2 + $0x618] sm:$0xf]  ;;  %v3698_v43 = vor.u32 %v4582_v31, %v3697_v28  ;;  %v4118_v15 = vor.u32 %v4682_v5, %v4115_v6  ;;  %v3571_v16 = vld [vmem:[%s5267_s2 + $0x338] sm:$0xf0] }
 0x140   : > { %2262 = vmatpush.bf16.msra.mxu3 %v4018_v12  ;;  %v4646_v33 = vld [vmem:[%s5267_s2 + $0x634] sm:$0xf0]  ;;  %2237 = vmatpush.bf16.msra.mxu1 %v3474_v23  ;;  %v4482_v12 = vld [vmem:[%s5267_s2 + $0x11c] sm:$0xf] }
 0x141   : > { %v3954_v46 = vor.u32 %v4646_v33, %v3953_v32  ;;  %v4610_v17 = vld [vmem:[%s5267_s2 + $0x51c] sm:$0xf]  ;;  %v3318_v22 = vor.u32 %v4482_v12, %v3315_v13 }
 0x142   : > { %2250 = vmatpush.bf16.msra.mxu2 %v3730_v24  ;;  %2225 = vmatpush.bf16.msra.mxu0 %v3186_v38  ;;  %v3827_v18 = vld [vmem:[%s5267_s2 + $0x538] sm:$0xf0]  ;;  %v2019_v23 = vpop.f32.mrf.mxu0  ;;  %v3574_v24 = vor.u32 %v4546_v14, %v3571_v16 }
 0x143   : > { %v4674_v20 = vld [vmem:[%s5267_s2 + $0x71c] sm:$0xf]  ;;  %v3830_v25 = vor.u32 %v4610_v17, %v3827_v18 }
 0x144   : > { %2263 = vmatpush.bf16.msra.mxu3 %v3986_v30  ;;  %2238 = vmatpush.bf16.msra.mxu1 %v3442_v42  ;;  %v4083_v21 = vld [vmem:[%s5267_s2 + $0x738] sm:$0xf0]  ;;  %v2032_v30 = vpop.f32.mrf.mxu1 }
 0x145   : > { %2226 = vmatmul.bf16.vlgmr.msra.gmra.mxu0 %v5387_v19  ;;  %v4474_v27 = vld [vmem:[%s5267_s2 + $0xdc] sm:$0xf]  ;;  %v4086_v31 = vor.u32 %v4674_v20, %v4083_v21  ;;  %v2033_v35 = vadd.f32 %v2032_v30, %v2019_v23 }
 0x146   : > { %2251 = vmatpush.bf16.msra.mxu2 %v3698_v43  ;;  %2270 = vmatpush.bf16.msrb.mxu0 %v3414_v47  ;;  %v3283_v28 = vld [vmem:[%s5267_s2 + $0xf8] sm:$0xf0] }
 0x147   : > { %2239 = vmatmul.bf16.vlgmr.msra.gmra.mxu1 %v5393_v26  ;;  %v4538_v29 = vld [vmem:[%s5267_s2 + $0x2dc] sm:$0xf]  ;;  %v3286_v38 = vor.u32 %v4474_v27, %v3283_v28 }
 0x148   : > { %2264 = vmatpush.bf16.msra.mxu3 %v3954_v46  ;;  %2283 = vmatpush.bf16.msrb.mxu1 %v3670_v48  ;;  %v3539_v32 = vld [vmem:[%s5267_s2 + $0x2f8] sm:$0xf0] }
 0x149   : > { %2252 = vmatmul.bf16.vlgmr.msra.gmra.mxu2 %v5375_v9  ;;  %v4602_v33 = vld [vmem:[%s5267_s2 + $0x4dc] sm:$0xf]  ;;  %v3542_v39 = vor.u32 %v4538_v29, %v3539_v32 }
 0x14a   : > { %2296 = vmatpush.bf16.msrb.mxu2 %v3926_v49  ;;  %2271 = vmatpush.bf16.msrb.mxu0 %v3382_v59  ;;  %v3795_v34 = vld [vmem:[%s5267_s2 + $0x4f8] sm:$0xf0]  ;;  %v2021_v56 = vpop.f32.mrf.mxu0 }
 0x14b   : > { %2265 = vmatmul.bf16.vlgmr.msra.gmra.mxu3 %v5377_v10  ;;  %v4666_v36 = vld [vmem:[%s5267_s2 + $0x6dc] sm:$0xf]  ;;  %v3798_v40 = vor.u32 %v4602_v33, %v3795_v34  ;;  %v357_v34 = vld [vmem:[#allocation2 + $0x10] sm:$0xff]  ;;  %v359_v56 = vld [vmem:[#allocation2 + $0x20] sm:$0xff] }
 0x14c   : > { %2309 = vmatpush.bf16.msrb.mxu3 %v4182_v53  ;;  %2284 = vmatpush.bf16.msrb.mxu1 %v3638_v60  ;;  %v4051_v37 = vld [vmem:[%s5267_s2 + $0x6f8] sm:$0xf0]  ;;  %v2045_v44 = vpop.f32.mrf.mxu2  ;;  %v2034_v62 = vpop.f32.mrf.mxu1 }
 0x14d   : > { %v4466_v41 = vld [vmem:[%s5267_s2 + $0x9c] sm:$0xf]  ;;  %v4054_v45 = vor.u32 %v4666_v36, %v4051_v37  ;;  %v2046_v49 = vadd.f32 %v2045_v44, %v2033_v35 }
 0x14e   : > { %2297 = vmatpush.bf16.msrb.mxu2 %v3894_v61  ;;  %2272 = vmatpush.bf16.msrb.mxu0 %v3350_v7  ;;  %v3251_v42 = vld [vmem:[%s5267_s2 + $0xb8] sm:$0xf0]  ;;  %v2058_v50 = vpop.f32.mrf.mxu3 }
 0x14f   : > { %v4530_v43 = vld [vmem:[%s5267_s2 + $0x29c] sm:$0xf]  ;;  %v3254_v54 = vor.u32 %v4466_v41, %v3251_v42  ;;  %v2059_v55 = vadd.f32 %v2058_v50, %v2046_v49 }
 0x150   : > { %2310 = vmatpush.bf16.msrb.mxu3 %v4150_v1  ;;  %2285 = vmatpush.bf16.msrb.mxu1 %v3606_v8  ;;  %v3507_v46 = vld [vmem:[%s5267_s2 + $0x2b8] sm:$0xf0] }
 0x151   : > { %v4594_v47 = vld [vmem:[%s5267_s2 + $0x49c] sm:$0xf]  ;;  %v3510_v57 = vor.u32 %v4530_v43, %v3507_v46  ;;  %v358_v43 = vld [vmem:[#allocation2 + $0x8] sm:$0xff] }
 0x152   : > { %2298 = vmatpush.bf16.msrb.mxu2 %v3862_v11  ;;  %2273 = vmatpush.bf16.msrb.mxu0 %v3318_v22  ;;  %v3763_v48 = vld [vmem:[%s5267_s2 + $0x4b8] sm:$0xf0] }
 0x153   : > { %v4658_v51 = vld [vmem:[%s5267_s2 + $0x69c] sm:$0xf]  ;;  %v3766_v58 = vor.u32 %v4594_v47, %v3763_v48 }
 0x154   : > { %2311 = vmatpush.bf16.msrb.mxu3 %v4118_v15  ;;  %2286 = vmatpush.bf16.msrb.mxu1 %v3574_v24  ;;  %v4019_v52 = vld [vmem:[%s5267_s2 + $0x6b8] sm:$0xf0]  ;;  %v2047_v14 = vpop.f32.mrf.mxu2 }
 0x155   : > { %v356_v53 = vld [vmem:[#allocation2 + $0x18] sm:$0xff]  ;;  %v4022_v63 = vor.u32 %v4658_v51, %v4019_v52 }
 0x156   : > { %2299 = vmatpush.bf16.msrb.mxu2 %v3830_v25  ;;  %2274 = vmatpush.bf16.msrb.mxu0 %v3286_v38  ;;  %v4458_v59 = vld [vmem:[%s5267_s2 + $0x5c] sm:$0xf]  ;;  %v2324_v3 = vadd.f32 %v2059_v55, %v356_v53  ;;  %v2060_v20 = vpop.f32.mrf.mxu3 }
 0x157   : > { %v3219_v60 = vld [vmem:[%s5267_s2 + $0x78] sm:$0xf0] }
 0x158   : > { %2312 = vmatpush.bf16.msrb.mxu3 %v4086_v31  ;;  %2287 = vmatpush.bf16.msrb.mxu1 %v3542_v39  ;;  %v4522_v61 = vld [vmem:[%s5267_s2 + $0x25c] sm:$0xf]  ;;  %v3222_v6 = vor.u32 %v4458_v59, %v3219_v60  ;;  %2332 = vst [vmem:[#allocation2 + $0x18] sm:$0xff] %v2324_v3 }
 0x159   : > { %v3475_v0 = vld [vmem:[%s5267_s2 + $0x278] sm:$0xf0] }
 0x15a   : > { %2300 = vmatpush.bf16.msrb.mxu2 %v3798_v40  ;;  %v4586_v1 = vld [vmem:[%s5267_s2 + $0x45c] sm:$0xf]  ;;  %2275 = vmatpush.bf16.msrb.mxu0 %v3254_v54  ;;  %v3478_v7 = vor.u32 %v4522_v61, %v3475_v0 }
 0x15b   : > { %v3731_v2 = vld [vmem:[%s5267_s2 + $0x478] sm:$0xf0] }
 0x15c   : > { %2313 = vmatpush.bf16.msrb.mxu3 %v4054_v45  ;;  %v4650_v4 = vld [vmem:[%s5267_s2 + $0x65c] sm:$0xf]  ;;  %2288 = vmatpush.bf16.msrb.mxu1 %v3510_v57  ;;  %v3734_v8 = vor.u32 %v4586_v1, %v3731_v2 }
 0x15d   : > { %v3987_v5 = vld [vmem:[%s5267_s2 + $0x678] sm:$0xf0] }
 0x15e   : > { %2301 = vmatpush.bf16.msrb.mxu2 %v3766_v58  ;;  %v4450_v11 = vld [vmem:[%s5267_s2 + $0x1c] sm:$0xf]  ;;  %v3990_v15 = vor.u32 %v4650_v4, %v3987_v5  ;;  %2276 = vmatpush.bf16.msrb.mxu0 %v3222_v6  ;;  %v360_v5 = vld [vmem:[#allocation2 + $0x28] sm:$0xff] }
 0x15f   : > { %v3187_v12 = vld [vmem:[%s5267_s2 + $0x38] sm:$0xf0] }
 0x160   : > { %v4514_v13 = vld [vmem:[%s5267_s2 + $0x21c] sm:$0xf]  ;;  %2314 = vmatpush.bf16.msrb.mxu3 %v4022_v63  ;;  %v3190_v23 = vor.u32 %v4450_v11, %v3187_v12  ;;  %2289 = vmatpush.bf16.msrb.mxu1 %v3478_v7 }
 0x161   : > { %v3443_v16 = vld [vmem:[%s5267_s2 + $0x238] sm:$0xf0] }
 0x162   : > { %v4578_v17 = vld [vmem:[%s5267_s2 + $0x41c] sm:$0xf]  ;;  %2302 = vmatpush.bf16.msrb.mxu2 %v3734_v8  ;;  %v3446_v24 = vor.u32 %v4514_v13, %v3443_v16  ;;  %2277 = vmatpush.bf16.msrb.mxu0 %v3190_v23  ;;  %v2071_v28 = vpop.f32.mrf.mxu0 }
 0x163   : > { %v3699_v18 = vld [vmem:[%s5267_s2 + $0x438] sm:$0xf0] }
 0x164   : > { %v4642_v21 = vld [vmem:[%s5267_s2 + $0x61c] sm:$0xf]  ;;  %v3702_v25 = vor.u32 %v4578_v17, %v3699_v18  ;;  %2315 = vmatpush.bf16.msrb.mxu3 %v3990_v15  ;;  %2290 = vmatpush.bf16.msrb.mxu1 %v3446_v24  ;;  %v2084_v29 = vpop.f32.mrf.mxu1 }
 0x165   : > { %v3955_v22 = vld [vmem:[%s5267_s2 + $0x638] sm:$0xf0]  ;;  %2278 = vmatmul.bf16.vlgmr.msrb.gmra.mxu0 %v5387_v19  ;;  %v2085_v30 = vadd.f32 %v2084_v29, %v2071_v28 }
 0x166   : > { %v3958_v27 = vor.u32 %v4642_v21, %v3955_v22  ;;  %2303 = vmatpush.bf16.msrb.mxu2 %v3702_v25  ;;  %v361_v22 = vld [vmem:[#allocation2 + $0x38] sm:$0xff] }
 0x167   : > { %2291 = vmatmul.bf16.vlgmr.msrb.gmra.mxu1 %v5393_v26 }
 0x168   : > { %2316 = vmatpush.bf16.msrb.mxu3 %v3958_v27 }
 0x169   : > { %2304 = vmatmul.bf16.vlgmr.msrb.gmra.mxu2 %v5375_v9 }
 0x16a   : > { %v2073_v36 = vpop.f32.mrf.mxu0 }
 0x16b   : > { %2317 = vmatmul.bf16.vlgmr.msrb.gmra.mxu3 %v5377_v10 }
 0x16c   : > { %v2097_v31 = vpop.f32.mrf.mxu2  ;;  %v2086_v37 = vpop.f32.mrf.mxu1 }
 0x16d   : > { %v2098_v32 = vadd.f32 %v2097_v31, %v2085_v30 }
 0x16e   : > { %v2110_v33 = vpop.f32.mrf.mxu3 }
 0x16f   : > { %v2111_v35 = vadd.f32 %v2110_v33, %v2098_v32 }
 0x171   : > { %v2325_v38 = vadd.f32 %v2111_v35, %v357_v34 }
 0x173   : > { %2333 = vst [vmem:[#allocation2 + $0x10] sm:$0xff] %v2325_v38 }
 0x174   : > { %v2099_v39 = vpop.f32.mrf.mxu2 }
 0x176   : > { %v2112_v19 = vpop.f32.mrf.mxu3 }
 0x182   : > { %v2123_v40 = vpop.f32.mrf.mxu0 }
 0x184   : > { %v2136_v26 = vpop.f32.mrf.mxu1 }
 0x185   : > { %v2137_v41 = vadd.f32 %v2136_v26, %v2123_v40 }
 0x18a   : > { %v2125_v45 = vpop.f32.mrf.mxu0 }
 0x18c   : > { %v2149_v9 = vpop.f32.mrf.mxu2  ;;  %v2138_v46 = vpop.f32.mrf.mxu1 }
 0x18d   : > { %v2150_v42 = vadd.f32 %v2149_v9, %v2137_v41 }
 0x18e   : > { %v2162_v10 = vpop.f32.mrf.mxu3 }
 0x18f   : > { %v2163_v44 = vadd.f32 %v2162_v10, %v2150_v42 }
 0x191   : > { %v2326_v47 = vadd.f32 %v2163_v44, %v358_v43 }
 0x193   : > { %2334 = vst [vmem:[#allocation2 + $0x8] sm:$0xff] %v2326_v47 }
 0x194   : > { %v2151_v48 = vpop.f32.mrf.mxu2 }
 0x196   : > { %v2164_v49 = vpop.f32.mrf.mxu3 }
 0x1a2   : > { %v2175_v50 = vpop.f32.mrf.mxu0 }
 0x1a4   : > { %v2188_v51 = vpop.f32.mrf.mxu1 }
 0x1a5   : > { %v2189_v52 = vadd.f32 %v2188_v51, %v2175_v50 }
 0x1aa   : > { %v2177_v58 = vpop.f32.mrf.mxu0 }
 0x1ac   : > { %v2201_v53 = vpop.f32.mrf.mxu2  ;;  %v2190_v59 = vpop.f32.mrf.mxu1 }
 0x1ad   : > { %v2202_v54 = vadd.f32 %v2201_v53, %v2189_v52 }
 0x1ae   : > { %v2214_v55 = vpop.f32.mrf.mxu3 }
 0x1af   : > { %v2215_v57 = vadd.f32 %v2214_v55, %v2202_v54 }
 0x1b1   : > { %v2327_v60 = vadd.f32 %v2215_v57, %v359_v56 }
 0x1b3   : > { %2335 = vst [vmem:[#allocation2 + $0x20] sm:$0xff] %v2327_v60 }
 0x1b4   : > { %v2203_v61 = vpop.f32.mrf.mxu2 }
 0x1b6   : > { %v2216_v62 = vpop.f32.mrf.mxu3 }
 0x1c2   : > { %v2227_v63 = vpop.f32.mrf.mxu0 }
 0x1c4   : > { %v2240_v0 = vpop.f32.mrf.mxu1 }
 0x1c5   : > { %v2241_v1 = vadd.f32 %v2240_v0, %v2227_v63 }
 0x1ca   : > { %v2229_v7 = vpop.f32.mrf.mxu0 }
 0x1cc   : > { %v2253_v2 = vpop.f32.mrf.mxu2  ;;  %v2242_v8 = vpop.f32.mrf.mxu1 }
 0x1cd   : > { %v2254_v3 = vadd.f32 %v2253_v2, %v2241_v1 }
 0x1ce   : > { %v2266_v4 = vpop.f32.mrf.mxu3 }
 0x1cf   : > { %v2267_v6 = vadd.f32 %v2266_v4, %v2254_v3 }
 0x1d1   : > { %v2328_v11 = vadd.f32 %v2267_v6, %v360_v5 }
 0x1d3   : > { %2336 = vst [vmem:[#allocation2 + $0x28] sm:$0xff] %v2328_v11 }
 0x1d4   : > { %v2255_v12 = vpop.f32.mrf.mxu2 }
 0x1d6   : > { %v2268_v13 = vpop.f32.mrf.mxu3 }
 0x1e2   : > { %v2279_v14 = vpop.f32.mrf.mxu0 }
 0x1e4   : > { %v2292_v15 = vpop.f32.mrf.mxu1 }
 0x1e5   : > { %v2293_v16 = vadd.f32 %v2292_v15, %v2279_v14 }
 0x1ea   : > { %v2281_v21 = vpop.f32.mrf.mxu0 }
 0x1ec   : > { %v2305_v17 = vpop.f32.mrf.mxu2  ;;  %v2294_v23 = vpop.f32.mrf.mxu1 }
 0x1ed   : > { %v2306_v18 = vadd.f32 %v2305_v17, %v2293_v16 }
 0x1ee   : > { %v2318_v20 = vpop.f32.mrf.mxu3 }
 0x1ef   : > { %v2319_v24 = vadd.f32 %v2318_v20, %v2306_v18 }
 0x1f1   : > { %v2329_v25 = vadd.f32 %v2319_v24, %v361_v22 }
 0x1f2   : > { %2341 = sbr.rel (%p4183_p1) target bundleno = 710 (0x2c6), region = 68 }
 0x1f3   : > { %2337 = vst [vmem:[#allocation2 + $0x38] sm:$0xff] %v2329_v25 }
 0x1f4   : > { %v2307_v27 = vpop.f32.mrf.mxu2 }
 0x1f6   : > { %v2320_v28 = vpop.f32.mrf.mxu3 }
 0x1f7   : > { %v4710_v29 = vld [vmem:[#allocation9 + $0x38] sm:$0xff]  ;;  %v4709_v33 = vld [vmem:[#allocation9 + $0x30] sm:$0xff]  ;;  %v4708_v37 = vld [vmem:[#allocation9 + $0x28] sm:$0xff] }
 0x1f8   : > { %v4718_v30 = vld [vmem:[#allocation9 + $0x78] sm:$0xff]  ;;  %2908 = vmatpush.bf16.msra.mxu0 %v4710_v29  ;;  %v4717_v34 = vld [vmem:[#allocation9 + $0x70] sm:$0xff]  ;;  %v4716_v38 = vld [vmem:[#allocation9 + $0x68] sm:$0xff] }
 0x1f9   : > { %v4726_v31 = vld [vmem:[#allocation9 + $0xb8] sm:$0xff]  ;;  %2921 = vmatpush.bf16.msra.mxu1 %v4718_v30  ;;  %v4725_v35 = vld [vmem:[#allocation9 + $0xb0] sm:$0xff]  ;;  %v4724_v39 = vld [vmem:[#allocation9 + $0xa8] sm:$0xff] }
 0x1fa   : > { %v4734_v32 = vld [vmem:[#allocation9 + $0xf8] sm:$0xff]  ;;  %2934 = vmatpush.bf16.msra.mxu2 %v4726_v31  ;;  %v4733_v36 = vld [vmem:[#allocation9 + $0xf0] sm:$0xff]  ;;  %v4732_v19 = vld [vmem:[#allocation9 + $0xe8] sm:$0xff] }
 0x1fb   : > { %2947 = vmatpush.bf16.msra.mxu3 %v4734_v32  ;;  %v4707_v40 = vld [vmem:[#allocation9 + $0x20] sm:$0xff]  ;;  %v4706_v42 = vld [vmem:[#allocation9 + $0x18] sm:$0xff]  ;;  %v4705_v46 = vld [vmem:[#allocation9 + $0x10] sm:$0xff] }
 0x1fc   : > { %2909 = vmatpush.bf16.msra.mxu0 %v4709_v33  ;;  %v4715_v26 = vld [vmem:[#allocation9 + $0x60] sm:$0xff]  ;;  %v4714_v10 = vld [vmem:[#allocation9 + $0x58] sm:$0xff]  ;;  %v4713_v47 = vld [vmem:[#allocation9 + $0x50] sm:$0xff] }
 0x1fd   : > { %2922 = vmatpush.bf16.msra.mxu1 %v4717_v34  ;;  %v4723_v41 = vld [vmem:[#allocation9 + $0xa0] sm:$0xff]  ;;  %v4722_v43 = vld [vmem:[#allocation9 + $0x98] sm:$0xff]  ;;  %v4721_v48 = vld [vmem:[#allocation9 + $0x90] sm:$0xff] }
 0x1fe   : > { %2935 = vmatpush.bf16.msra.mxu2 %v4725_v35  ;;  %v4731_v9 = vld [vmem:[#allocation9 + $0xe0] sm:$0xff]  ;;  %v4730_v44 = vld [vmem:[#allocation9 + $0xd8] sm:$0xff]  ;;  %v4729_v51 = vld [vmem:[#allocation9 + $0xd0] sm:$0xff] }
 0x1ff   : > { %2948 = vmatpush.bf16.msra.mxu3 %v4733_v36  ;;  %v5839_v45 = vld [vmem:[#allocation8] sm:$0xff]  ;;  %v2344_v52 = vld [vmem:[#allocation2 + $0x18] sm:$0xff]  ;;  %v2345_v53 = vld [vmem:[#allocation2 + $0x10] sm:$0xff] }
 0x200   : > { %2910 = vmatpush.bf16.msra.mxu0 %v4708_v37  ;;  %v2354_v49 = vperm.slane %v5839_v45, 2  ;;  %v2355_v50 = vperm.slane %v5839_v45, 3  ;;  %v2352_v54 = vperm.slane %v5839_v45, 0  ;;  %v2353_v55 = vperm.slane %v5839_v45, 1  ;;  %v2342_v56 = vld [vmem:[#allocation2 + $0x30] sm:$0xff]  ;;  %v2343_v57 = vld [vmem:[#allocation2] sm:$0xff] }
 0x201   : > { %2923 = vmatpush.bf16.msra.mxu1 %v4716_v38  ;;  %v4704_v58 = vld [vmem:[#allocation9 + $0x8] sm:$0xff]  ;;  %v4703_v2 = vld [vmem:[#allocation9] sm:$0xff]  ;;  %v4742_v12 = vld [vmem:[#allocation9 + $0x138] sm:$0xff] }
 0x202   : > { %2936 = vmatpush.bf16.msra.mxu2 %v4724_v39  ;;  %v4712_v59 = vld [vmem:[#allocation9 + $0x48] sm:$0xff]  ;;  %v2370_v60 = vadd.f32 %v2354_v49, %v2344_v52  ;;  %v2371_v61 = vadd.f32 %v2355_v50, %v2345_v53  ;;  %v2368_v0 = vadd.f32 %v2352_v54, %v2342_v56  ;;  %v2369_v1 = vadd.f32 %v2353_v55, %v2343_v57  ;;  %v4711_v3 = vld [vmem:[#allocation9 + $0x40] sm:$0xff]  ;;  %v4750_v13 = vld [vmem:[#allocation9 + $0x178] sm:$0xff] }
 0x203   : > { %2949 = vmatpush.bf16.msra.mxu3 %v4732_v19  ;;  %v4720_v62 = vld [vmem:[#allocation9 + $0x88] sm:$0xff]  ;;  %v4719_v6 = vld [vmem:[#allocation9 + $0x80] sm:$0xff]  ;;  %v4758_v14 = vld [vmem:[#allocation9 + $0x1b8] sm:$0xff]  ;;  %v2356_v19 = vperm.slane %v5839_v45, 4 }
 0x204   : > { %2911 = vmatpush.bf16.msra.mxu0 %v4707_v40  ;;  %v4728_v63 = vld [vmem:[#allocation9 + $0xc8] sm:$0xff]  ;;  %v2378_v4 = vmax.f32 %v2370_v60, 0.0  ;;  %v2379_v5 = vmax.f32 %v2371_v61, 0.0  ;;  %v4727_v7 = vld [vmem:[#allocation9 + $0xc0] sm:$0xff]  ;;  %v2376_v8 = vmax.f32 %v2368_v0, 0.0  ;;  %v2377_v11 = vmax.f32 %v2369_v1, 0.0 }
 0x205   : > { %2924 = vmatpush.bf16.msra.mxu1 %v4715_v26  ;;  %v4766_v15 = vld [vmem:[#allocation9 + $0x1f8] sm:$0xff]  ;;  %v4741_v21 = vld [vmem:[#allocation9 + $0x130] sm:$0xff]  ;;  %v4740_v25 = vld [vmem:[#allocation9 + $0x128] sm:$0xff]  ;;  %v2357_v40 = vperm.slane %v5839_v45, 5 }
 0x206   : > { %2937 = vmatpush.bf16.msra.mxu2 %v4723_v41  ;;  %v2386_v16 = vpack.c.bf16 %v2378_v4, %v2378_v4  ;;  %v2387_v17 = vpack.c.bf16 %v2379_v5, %v2379_v5  ;;  %v2384_v18 = vpack.c.bf16 %v2376_v8, %v2376_v8  ;;  %v2385_v20 = vpack.c.bf16 %v2377_v11, %v2377_v11  ;;  %v4749_v22 = vld [vmem:[#allocation9 + $0x170] sm:$0xff]  ;;  %v4748_v27 = vld [vmem:[#allocation9 + $0x168] sm:$0xff]  ;;  %v4739_v30 = vld [vmem:[#allocation9 + $0x120] sm:$0xff] }
 0x207   : > { %2950 = vmatpush.bf16.msra.mxu3 %v4731_v9  ;;  %v4757_v23 = vld [vmem:[#allocation9 + $0x1b0] sm:$0xff]  ;;  %v4756_v28 = vld [vmem:[#allocation9 + $0x1a8] sm:$0xff]  ;;  %v4747_v31 = vld [vmem:[#allocation9 + $0x160] sm:$0xff] }
 0x208   : > { %2912 = vmatpush.bf16.msra.mxu0 %v4706_v42  ;;  %v4765_v24 = vld [vmem:[#allocation9 + $0x1f0] sm:$0xff]  ;;  %v4764_v29 = vld [vmem:[#allocation9 + $0x1e8] sm:$0xff]  ;;  %v4755_v32 = vld [vmem:[#allocation9 + $0x1a0] sm:$0xff]  ;;  %v2358_v42 = vperm.slane %v5839_v45, 6 }
 0x209   : > { %2925 = vmatpush.bf16.msra.mxu1 %v4714_v10  ;;  %v4763_v33 = vld [vmem:[#allocation9 + $0x1e0] sm:$0xff]  ;;  %v4738_v34 = vld [vmem:[#allocation9 + $0x118] sm:$0xff]  ;;  %v4737_v38 = vld [vmem:[#allocation9 + $0x110] sm:$0xff]  ;;  %v2359_v10 = vperm.slane %v5839_v45, 7 }
 0x20a   : > { %2938 = vmatpush.bf16.msra.mxu2 %v4722_v43  ;;  %v4746_v35 = vld [vmem:[#allocation9 + $0x158] sm:$0xff]  ;;  %v4745_v39 = vld [vmem:[#allocation9 + $0x150] sm:$0xff]  ;;  %v2346_v41 = vld [vmem:[#allocation2 + $0x8] sm:$0xff] }
 0x20b   : > { %2951 = vmatpush.bf16.msra.mxu3 %v4730_v44  ;;  %v4754_v36 = vld [vmem:[#allocation9 + $0x198] sm:$0xff]  ;;  %v4753_v26 = vld [vmem:[#allocation9 + $0x190] sm:$0xff]  ;;  %v2348_v44 = vld [vmem:[#allocation2 + $0x28] sm:$0xff] }
 0x20c   : > { %2913 = vmatpush.bf16.msra.mxu0 %v4705_v46  ;;  %v4762_v37 = vld [vmem:[#allocation9 + $0x1d8] sm:$0xff]  ;;  %v4761_v43 = vld [vmem:[#allocation9 + $0x1d0] sm:$0xff]  ;;  %v4736_v49 = vld [vmem:[#allocation9 + $0x108] sm:$0xff] }
 0x20d   : > { %2926 = vmatpush.bf16.msra.mxu1 %v4713_v47  ;;  %v2347_v9 = vld [vmem:[#allocation2 + $0x20] sm:$0xff]  ;;  %v2349_v46 = vld [vmem:[#allocation2 + $0x38] sm:$0xff]  ;;  %v2372_v47 = vadd.f32 %v2356_v19, %v2346_v41  ;;  %v4744_v50 = vld [vmem:[#allocation9 + $0x148] sm:$0xff] }
 0x20e   : > { %2939 = vmatpush.bf16.msra.mxu2 %v4721_v48  ;;  %v2373_v48 = vadd.f32 %v2357_v40, %v2347_v9  ;;  %v2375_v52 = vadd.f32 %v2359_v10, %v2349_v46  ;;  %v4752_v53 = vld [vmem:[#allocation9 + $0x188] sm:$0xff]  ;;  %v4735_v45 = vld [vmem:[#allocation9 + $0x100] sm:$0xff] }
 0x20f   : > { %2952 = vmatpush.bf16.msra.mxu3 %v4729_v51  ;;  %v2374_v51 = vadd.f32 %v2358_v42, %v2348_v44  ;;  %v4760_v54 = vld [vmem:[#allocation9 + $0x1c8] sm:$0xff]  ;;  %v2380_v55 = vmax.f32 %v2372_v47, 0.0  ;;  %v4743_v57 = vld [vmem:[#allocation9 + $0x140] sm:$0xff] }
 0x210   : > { %2914 = vmatpush.bf16.msra.mxu0 %v4704_v58  ;;  %v2381_v56 = vmax.f32 %v2373_v48, 0.0  ;;  %v4751_v60 = vld [vmem:[#allocation9 + $0x180] sm:$0xff] }
 0x211   : > { %2927 = vmatpush.bf16.msra.mxu1 %v4712_v59  ;;  %v2382_v58 = vmax.f32 %v2374_v51, 0.0  ;;  %v2383_v59 = vmax.f32 %v2375_v52, 0.0  ;;  %v4759_v61 = vld [vmem:[#allocation9 + $0x1c0] sm:$0xff] }
 0x212   : > { %2940 = vmatpush.bf16.msra.mxu2 %v4720_v62  ;;  %v2388_v62 = vpack.c.bf16 %v2380_v55, %v2380_v55  ;;  %v4870_v8 = vld [vmem:[#allocation11] ss:$0 sm:$0xff] }
 0x213   : > { %2953 = vmatpush.bf16.msra.mxu3 %v4728_v63  ;;  %v2389_v63 = vpack.c.bf16 %v2381_v56, %v2381_v56  ;;  %v2390_v0 = vpack.c.bf16 %v2382_v58, %v2382_v58  ;;  %v2391_v1 = vpack.c.bf16 %v2383_v59, %v2383_v59 }
 0x214   : > { %2915 = vmatpush.bf16.msra.mxu0 %v4703_v2 }
 0x215   : > { %2928 = vmatpush.bf16.msra.mxu1 %v4711_v3 }
 0x216   : > { %2941 = vmatpush.bf16.msra.mxu2 %v4719_v6 }
 0x217   : > { %2954 = vmatpush.bf16.msra.mxu3 %v4727_v7  ;;  %2916 = vmatmul.bf16.vlgmr.msra.gmra.mxu0 %v2384_v18 }
 0x218   : > { %2960 = vmatpush.bf16.msrb.mxu0 %v4742_v12  ;;  %2929 = vmatmul.bf16.vlgmr.msra.gmra.mxu1 %v2385_v20 }
 0x219   : > { %2973 = vmatpush.bf16.msrb.mxu1 %v4750_v13  ;;  %2942 = vmatmul.bf16.vlgmr.msra.gmra.mxu2 %v2386_v16 }
 0x21a   : > { %2986 = vmatpush.bf16.msrb.mxu2 %v4758_v14  ;;  %2955 = vmatmul.bf16.vlgmr.msra.gmra.mxu3 %v2387_v17 }
 0x21b   : > { %2999 = vmatpush.bf16.msrb.mxu3 %v4766_v15 }
 0x21c   : > { %2961 = vmatpush.bf16.msrb.mxu0 %v4741_v21 }
 0x21d   : > { %2974 = vmatpush.bf16.msrb.mxu1 %v4749_v22 }
 0x21e   : > { %2987 = vmatpush.bf16.msrb.mxu2 %v4757_v23 }
 0x21f   : > { %3000 = vmatpush.bf16.msrb.mxu3 %v4765_v24 }
 0x220   : > { %2962 = vmatpush.bf16.msrb.mxu0 %v4740_v25 }
 0x221   : > { %2975 = vmatpush.bf16.msrb.mxu1 %v4748_v27 }
 0x222   : > { %2988 = vmatpush.bf16.msrb.mxu2 %v4756_v28 }
 0x223   : > { %3001 = vmatpush.bf16.msrb.mxu3 %v4764_v29 }
 0x224   : > { %2963 = vmatpush.bf16.msrb.mxu0 %v4739_v30 }
 0x225   : > { %2976 = vmatpush.bf16.msrb.mxu1 %v4747_v31 }
 0x226   : > { %2989 = vmatpush.bf16.msrb.mxu2 %v4755_v32 }
 0x227   : > { %3002 = vmatpush.bf16.msrb.mxu3 %v4763_v33 }
 0x228   : > { %2964 = vmatpush.bf16.msrb.mxu0 %v4738_v34 }
 0x229   : > { %2977 = vmatpush.bf16.msrb.mxu1 %v4746_v35 }
 0x22a   : > { %2990 = vmatpush.bf16.msrb.mxu2 %v4754_v36 }
 0x22b   : > { %3003 = vmatpush.bf16.msrb.mxu3 %v4762_v37 }
 0x22c   : > { %2965 = vmatpush.bf16.msrb.mxu0 %v4737_v38 }
 0x22d   : > { %2978 = vmatpush.bf16.msrb.mxu1 %v4745_v39 }
 0x22e   : > { %2991 = vmatpush.bf16.msrb.mxu2 %v4753_v26 }
 0x22f   : > { %3004 = vmatpush.bf16.msrb.mxu3 %v4761_v43 }
 0x230   : > { %2966 = vmatpush.bf16.msrb.mxu0 %v4736_v49 }
 0x231   : > { %2979 = vmatpush.bf16.msrb.mxu1 %v4744_v50 }
 0x232   : > { %2992 = vmatpush.bf16.msrb.mxu2 %v4752_v53 }
 0x233   : > { %3005 = vmatpush.bf16.msrb.mxu3 %v4760_v54 }
 0x234   : > { %2967 = vmatpush.bf16.msrb.mxu0 %v4735_v45 }
 0x235   : > { %2980 = vmatpush.bf16.msrb.mxu1 %v4743_v57 }
 0x236   : > { %2993 = vmatpush.bf16.msrb.mxu2 %v4751_v60 }
 0x237   : > { %3006 = vmatpush.bf16.msrb.mxu3 %v4759_v61  ;;  %2968 = vmatmul.bf16.vlgmr.msrb.gmra.mxu0 %v2388_v62 }
 0x238   : > { %2981 = vmatmul.bf16.vlgmr.msrb.gmra.mxu1 %v2389_v63 }
 0x239   : > { %2994 = vmatmul.bf16.vlgmr.msrb.gmra.mxu2 %v2390_v0 }
 0x23a   : > { %3007 = vmatmul.bf16.vlgmr.msrb.gmra.mxu3 %v2391_v1 }
 0x294   : > { %v2917_v2 = vpop.f32.mrf.mxu0 }
 0x295   : > { %v2930_v3 = vpop.f32.mrf.mxu1  ;;  %v2918_v13 = vadd.f32 %v4870_v8, %v2917_v2 }
 0x297   : > { %v2931_v14 = vadd.f32 %v2930_v3, %v2918_v13 }
 0x29c   : > { %v2943_v4 = vpop.f32.mrf.mxu2  ;;  %v2919_v6 = vpop.f32.mrf.mxu0 }
 0x29d   : > { %v2956_v5 = vpop.f32.mrf.mxu3  ;;  %v2932_v7 = vpop.f32.mrf.mxu1  ;;  %v2944_v15 = vadd.f32 %v2943_v4, %v2931_v14 }
 0x29f   : > { %v2957_v16 = vadd.f32 %v2956_v5, %v2944_v15 }
 0x2a4   : > { %v2945_v11 = vpop.f32.mrf.mxu2 }
 0x2a5   : > { %v2958_v12 = vpop.f32.mrf.mxu3 }
 0x2b4   : > { %v2969_v17 = vpop.f32.mrf.mxu0 }
 0x2b5   : > { %v2982_v18 = vpop.f32.mrf.mxu1  ;;  %v2970_v20 = vadd.f32 %v2969_v17, %v2957_v16 }
 0x2b7   : > { %v2983_v21 = vadd.f32 %v2982_v18, %v2970_v20 }
 0x2bc   : > { %v2995_v22 = vpop.f32.mrf.mxu2  ;;  %v2971_v25 = vpop.f32.mrf.mxu0 }
 0x2bd   : > { %v3008_v23 = vpop.f32.mrf.mxu3  ;;  %v2996_v24 = vadd.f32 %v2995_v22, %v2983_v21  ;;  %v2984_v27 = vpop.f32.mrf.mxu1 }
 0x2bf   : > { %v3009_v28 = vadd.f32 %v3008_v23, %v2996_v24 }
 0x2c1   : > { %3012 = vst [vmem:[#allocation12] sm:$0xff] %v3009_v28 }
 0x2c4   : > { %v2997_v29 = vpop.f32.mrf.mxu2 }
 0x2c5   : > { %v3010_v30 = vpop.f32.mrf.mxu3 }
 0x2c6 PF: > { %p4811_p3 = scmp.eq.s32.totalorder %s5185_s24, 3  ;;  %s3023_s29 = sshll.u32 %s5876_s5, 4  ;;  %s3024_s29 = int_to_ptr.hbm [resolvable:$true] %s3023_s29 }
 0x2c7   : > { %s5125_s26 = smov [#allocation12]  }
 0x2c8   : > { %s3021_s27 = sshll.u32 %s5125_s26, 4  ;;  %s3022_s27 = int_to_ptr.vmem [resolvable:$true] %s3021_s27 }
 0x2c9   : > { %4784 = dma.vmem_to_hbm [thread:$0]  (%p4811_p3), %s3022_s27, 128, %s3024_s29, [#allocation5]  }
 0x2ca   : > { %5090 = dma.done.wait (%p4811_p3), [#allocation5], 128  }
 0x2cb   : > { %5092 = vsyncadd (%p4811_p3), [#allocation5], 4294967168 }
 0x2cc PF: > { %s23_s23 = sadd.s32 1, %s5115_s23   ;;  %s5885_s18 = smov %s5099_s19 }
 0x2cd   : > { %p20_p4 = scmp.ge.s32.totalorder %s23_s23, 6   ;;  %s5886_s19 = smov %s5103_s20 }
 0x2ce   : > { %s5887_s20 = smov %s5237_s11  ;;  %s5888_s21 = smov %s5111_s22 }
 0x2cf   : > { %s5889_s22 = smov %s5891_s28  ;;  %22 = sbr.rel (!%p20_p4) target bundleno = 11 (0xb), region = 111 }
 0x2d4   :  { %3037 = vsyncpa [#allocation4], 1 }
 0x2d5   :  { %3039 = vsyncpa [#allocation4 + $0x1], 1 }
 0x2d6   :  { %3040 = vsyncpa [#allocation7], 1 }
 0x2d7   :  { %3042 = vsyncpa [#allocation7 + $0x1], 1 }
 0x2d8   :  { %3043 = vsyncpa [#allocation10], 1 }
 0x2d9   :  { %3044 = vsyncpa [#allocation5], 1 }
 0x2da   :  { %3046 = vsyncpa [#allocation5 + $0x1], 1 }

</bundles_post_ra>
